<compile_context>
chip_gen: v5e
topology: v5e:2x2
jax: 0.10.0
libtpu: 0.0.40
codegen_flags: <defaults>
</compile_context>

<pallas_src>
import jax
import jax.numpy as jnp
from jax.experimental import pallas as pl
from jax.experimental.pallas import tpu as pltpu

K1 = 5  # w_1 kernel size (valid conv)
K2 = 3  # w_2 kernel size (padding=1)


def _round_up(v, m):
    return ((v + m - 1) // m) * m


def _vmem_budget_bytes():
    """Generation-aware scoped-VMEM budget (leave headroom for the compiler)."""
    try:
        cap = int(pltpu.get_tpu_info().vmem_capacity_bytes)
        return max(32 << 20, min((cap * 3) // 4, 112 << 20))
    except Exception:
        return 48 << 20   # safe on v7x (64 MiB/TC), conservative on v5e/v6e


def positionwise_ffn(x, w1, b1, w2, b2, *, tl=512):
    """x: (B, L, C); w1: (K1, C, H); b1: (1, H); w2: (K2, H, C); b2: (1, C)."""
    B, L, C = x.shape
    H = w1.shape[-1]
    Lout = L - (K1 - 1)
    assert Lout > 0

    Cp = _round_up(C, 128)   # == C when d_model is already a multiple of 128
    Hp = _round_up(H, 128)   # == H when d_inner_hid is already a multiple of 128

    TL = max(8, min(_round_up(Lout, 8), _round_up(tl, 8)))  # output rows / tile
    nT = -(-Lout // TL)
    TW = TL + 8   # x rows per tile: 1 left + up-to-7 right halo (mult. of 8)
    NH = TL + 2   # conv1 rows per tile (+-1 halo rows feeding conv2's padding)

    # ---- wrapper-side plumbing (original dtype; pads are no-ops when aligned)
    xp = x
    if Cp != C:
        xp = jnp.pad(xp, ((0, 0), (0, 0), (0, Cp - C)))
    padded_L = (nT - 1) * TL + TW          # halo windows cover [0, padded_L)
    left = 1                               # window row 0 == global x row t*TL-1
    right = max(0, padded_L - left - L)
    xp = jnp.pad(xp, ((0, 0), (left, right), (0, 0)))
    # overlapping halo windows via one gather: (B, nT, TW, Cp), x.dtype
    win_idx = (jnp.arange(nT, dtype=jnp.int32)[:, None] * TL
               + jnp.arange(TW, dtype=jnp.int32)[None, :])
    xw = xp[:, win_idx, :]

    w1p = jnp.pad(w1.astype(jnp.bfloat16), ((0, 0), (0, Cp - C), (0, Hp - H)))
    w2p = jnp.pad(w2.astype(jnp.bfloat16), ((0, 0), (0, Hp - H), (0, Cp - C)))
    b1p = jnp.pad(jnp.reshape(b1, (1, H)).astype(jnp.float32),
                  ((0, 0), (0, Hp - H)))
    b2p = jnp.pad(jnp.reshape(b2, (1, C)).astype(jnp.float32),
                  ((0, 0), (0, Cp - C)))

    def kernel(x_ref, w1_ref, b1_ref, w2_ref, b2_ref, o_ref):
        t = pl.program_id(1)
        xw_in = x_ref[...]                        # (TW, Cp), x.dtype
        xb = xw_in.astype(jnp.bfloat16)           # bf16 operands for the MXU

        # ---- conv1 (k=5, valid): per-tap MXU matmuls, SSA f32 accumulation
        # (no VMEM scratch read-modify-write).
        acc = jnp.dot(xb[0:NH], w1_ref[0], preferred_element_type=jnp.float32)
        for k in range(1, K1):
            acc = acc + jnp.dot(xb[k:k + NH], w1_ref[k],
                                preferred_element_type=jnp.float32)

        # bias + ReLU in f32
        h = jnp.maximum(acc + b1_ref[...], 0.0)

        # Zero conv1 rows outside the valid range [0, Lout): realizes conv2's
        # zero padding at sequence boundaries and kills garbage rows of the
        # last, partially-filled tile.
        row = jax.lax.broadcasted_iota(jnp.int32, (NH, 1), 0)
        gidx = t * TL - 1 + row
        h = jnp.where((gidx >= 0) & (gidx < Lout), h, 0.0)
        hb = h.astype(jnp.bfloat16)

        # ---- conv2 (k=3, pad=1): full-row matmul per tap, combine shifted
        # slices of the (NH, Cp) results (no concatenate, no H-wide copies).
        z0 = jnp.dot(hb, w2_ref[0], preferred_element_type=jnp.float32)
        z1 = jnp.dot(hb, w2_ref[1], preferred_element_type=jnp.float32)
        z2 = jnp.dot(hb, w2_ref[2], preferred_element_type=jnp.float32)
        y = z0[0:TL] + z1[1:1 + TL] + z2[2:2 + TL] + b2_ref[...]

        # dropout: identity (eval mode)
        # residual: center-aligned crop of x, upcast in-register
        y = y + xw_in[3:3 + TL, :].astype(jnp.float32)

        o_ref[...] = y.astype(o_ref.dtype)

    def build_and_run(weight_mode):
        extra = {} if weight_mode is None else {"pipeline_mode": weight_mode}
        grid_spec = pltpu.PrefetchScalarGridSpec(
            num_scalar_prefetch=0,
            grid=(B, nT),
            in_specs=[
                pl.BlockSpec((None, None, TW, Cp), lambda b, t: (b, t, 0, 0)),
                pl.BlockSpec((K1, Cp, Hp), lambda b, t: (0, 0, 0), **extra),
                pl.BlockSpec((1, Hp), lambda b, t: (0, 0), **extra),
                pl.BlockSpec((K2, Hp, Cp), lambda b, t: (0, 0, 0), **extra),
                pl.BlockSpec((1, Cp), lambda b, t: (0, 0), **extra),
            ],
            out_specs=pl.BlockSpec((None, None, TL, Cp),
                                   lambda b, t: (b, t, 0, 0)),
        )
        return pl.pallas_call(
            kernel,
            out_shape=jax.ShapeDtypeStruct((B, nT, TL, Cp), x.dtype),
            grid_spec=grid_spec,
            compiler_params=pltpu.CompilerParams(
                dimension_semantics=("parallel", "parallel"),
                vmem_limit_bytes=_vmem_budget_bytes(),
            ),
        )(xw, w1p, b1p, w2p, b2p)

    try:
        # Single-buffer the grid-constant weights/biases (halves their VMEM
        # footprint on v7x at real model sizes).
        out = build_and_run(pl.Buffered(1))
    except Exception:
        # Fallback: default (double-buffered) weight blocks.
        out = build_and_run(None)

    out = out.reshape(B, nT * TL, Cp)[:, :Lout, :C]   # no-op when aligned
    return out.astype(x.dtype)


def ref_forward(x, w1, b1, w2, b2):
    """Pure-JAX f32 reference using lax.conv_general_dilated (independent path)."""
    xt = jnp.transpose(x, (0, 2, 1))                       # (B, C, L)
    w1_oik = jnp.transpose(w1, (2, 1, 0))                  # (H, C, K1)
    h = jax.lax.conv_general_dilated(
        xt, w1_oik, window_strides=(1,), padding="VALID",
        dimension_numbers=("NCH", "OIH", "NCH"))
    h = h + b1[0][None, :, None]
    h = jnp.maximum(h, 0.0)
    w2_oik = jnp.transpose(w2, (2, 1, 0))                  # (C, H, K2)
    y = jax.lax.conv_general_dilated(
        h, w2_oik, window_strides=(1,), padding=[(1, 1)],
        dimension_numbers=("NCH", "OIH", "NCH"))
    y = y + b2[0][None, :, None]
    y = jnp.transpose(y, (0, 2, 1))                        # (B, Lout, C)
    pad_l = (K1 - 1) // 2
    return y + x[:, pad_l:pad_l + y.shape[1], :]


if __name__ == "__main__":
    B, L = 2, 16
    d_model, d_inner_hid = 4, 8

    key = jax.random.PRNGKey(0)
    kx, kw1, kb1, kw2, kb2, kx2 = jax.random.split(key, 6)
    x = jax.random.normal(kx, (B, L, d_model), jnp.float32)
    # Deterministic synthetic parameters (Conv1d weights in (K, in, out) layout).
    w1 = 0.2 * jax.random.normal(kw1, (K1, d_model, d_inner_hid), jnp.float32)
    b1 = 0.1 * jax.random.normal(kb1, (1, d_inner_hid), jnp.float32)
    w2 = 0.2 * jax.random.normal(kw2, (K2, d_inner_hid, d_model), jnp.float32)
    b2 = 0.1 * jax.random.normal(kb2, (1, d_model), jnp.float32)

    # Single-tile case.
    out = positionwise_ffn(x, w1, b1, w2, b2)
    jax.block_until_ready(out)
    ref = ref_forward(x, w1, b1, w2, b2)
    assert out.shape == (B, L - (K1 - 1), d_model)
    # bf16 MXU operands with f32 accumulation -> slightly relaxed tolerance.
    assert jnp.allclose(out, ref, atol=5e-2, rtol=5e-2), (
        float(jnp.max(jnp.abs(out - ref))))

    # Multi-tile case (forces nT > 1 to exercise the halo / boundary masking).
    L2 = 40
    x2 = jax.random.normal(kx2, (B, L2, d_model), jnp.float32)
    out2 = positionwise_ffn(x2, w1, b1, w2, b2, tl=8)
    jax.block_until_ready(out2)
    ref2 = ref_forward(x2, w1, b1, w2, b2)
    assert out2.shape == (B, L2 - (K1 - 1), d_model)
    assert jnp.allclose(out2, ref2, atol=5e-2, rtol=5e-2), (
        float(jnp.max(jnp.abs(out2 - ref2))))

    print("KERNEL_OK")
</pallas_src>

<mosaic_0001>
module attributes {stable_mosaic.version = 11 : i64} {
  func.func @kernel(%arg0: i32, %arg1: i32, %arg2: memref<1x1x24x128xf32, #tpu.memory_space<vmem>>, %arg3: memref<5x128x128xbf16, #tpu.memory_space<vmem>>, %arg4: memref<1x128xf32, #tpu.memory_space<vmem>>, %arg5: memref<3x128x128xbf16, #tpu.memory_space<vmem>>, %arg6: memref<1x128xf32, #tpu.memory_space<vmem>>, %arg7: memref<1x1x16x128xf32, #tpu.memory_space<vmem>>) attributes {dimension_semantics = [#tpu.dimension_semantics<parallel>, #tpu.dimension_semantics<parallel>], iteration_bounds = array<i64: 2, 1>, scalar_prefetch = 0 : i64, scratch_operands = 0 : i64, tpu.core_type = #tpu.core_type<tc>, window_params = [{transform_indices = @transform_0, window_bounds = array<i64: 1, 1, 24, 128>}, {pipeline_mode = #tpu.pipeline_mode<synchronous>, transform_indices = @transform_1, window_bounds = array<i64: 5, 128, 128>}, {pipeline_mode = #tpu.pipeline_mode<synchronous>, transform_indices = @transform_2, window_bounds = array<i64: 1, 128>}, {pipeline_mode = #tpu.pipeline_mode<synchronous>, transform_indices = @transform_3, window_bounds = array<i64: 3, 128, 128>}, {pipeline_mode = #tpu.pipeline_mode<synchronous>, transform_indices = @transform_4, window_bounds = array<i64: 1, 128>}, {transform_indices = @transform_5, window_bounds = array<i64: 1, 1, 16, 128>}]} {
    %c0 = arith.constant 0 : index
    %c0_0 = arith.constant 0 : index
    %c0_1 = arith.constant 0 : index
    %c0_2 = arith.constant 0 : index
    %0 = vector.load %arg2[%c0, %c0_0, %c0_1, %c0_2] : memref<1x1x24x128xf32, #tpu.memory_space<vmem>>, vector<1x1x24x128xf32>
    %1 = vector.shape_cast %0 : vector<1x1x24x128xf32> to vector<24x128xf32>
    %2 = arith.truncf %1 : vector<24x128xf32> to vector<24x128xbf16>
    %3 = vector.extract_strided_slice %2 {offsets = [0, 0], sizes = [18, 128], strides = [1, 1]} : vector<24x128xbf16> to vector<18x128xbf16>
    %c0_3 = arith.constant 0 : index
    %c0_4 = arith.constant 0 : index
    %c0_5 = arith.constant 0 : index
    %4 = vector.load %arg3[%c0_3, %c0_4, %c0_5] : memref<5x128x128xbf16, #tpu.memory_space<vmem>>, vector<1x128x128xbf16>
    %5 = vector.shape_cast %4 : vector<1x128x128xbf16> to vector<128x128xbf16>
    %cst = arith.constant dense<0.000000e+00> : vector<18x128xf32>
    %6 = tpu.matmul %3, %5, %cst {dimension_numbers = #tpu.dot_dimension_numbers<[1], [0], [0], [1], [0, 0, 1, 1], [], []>} : vector<18x128xbf16>, vector<128x128xbf16>, vector<18x128xf32> -> vector<18x128xf32>
    %7 = vector.extract_strided_slice %2 {offsets = [1, 0], sizes = [18, 128], strides = [1, 1]} : vector<24x128xbf16> to vector<18x128xbf16>
    %c1 = arith.constant 1 : index
    %c0_6 = arith.constant 0 : index
    %c0_7 = arith.constant 0 : index
    %8 = vector.load %arg3[%c1, %c0_6, %c0_7] : memref<5x128x128xbf16, #tpu.memory_space<vmem>>, vector<1x128x128xbf16>
    %9 = vector.shape_cast %8 : vector<1x128x128xbf16> to vector<128x128xbf16>
    %cst_8 = arith.constant dense<0.000000e+00> : vector<18x128xf32>
    %10 = tpu.matmul %7, %9, %cst_8 {dimension_numbers = #tpu.dot_dimension_numbers<[1], [0], [0], [1], [0, 0, 1, 1], [], []>} : vector<18x128xbf16>, vector<128x128xbf16>, vector<18x128xf32> -> vector<18x128xf32>
    %11 = arith.addf %6, %10 : vector<18x128xf32>
    %12 = vector.extract_strided_slice %2 {offsets = [2, 0], sizes = [18, 128], strides = [1, 1]} : vector<24x128xbf16> to vector<18x128xbf16>
    %c2 = arith.constant 2 : index
    %c0_9 = arith.constant 0 : index
    %c0_10 = arith.constant 0 : index
    %13 = vector.load %arg3[%c2, %c0_9, %c0_10] : memref<5x128x128xbf16, #tpu.memory_space<vmem>>, vector<1x128x128xbf16>
    %14 = vector.shape_cast %13 : vector<1x128x128xbf16> to vector<128x128xbf16>
    %cst_11 = arith.constant dense<0.000000e+00> : vector<18x128xf32>
    %15 = tpu.matmul %12, %14, %cst_11 {dimension_numbers = #tpu.dot_dimension_numbers<[1], [0], [0], [1], [0, 0, 1, 1], [], []>} : vector<18x128xbf16>, vector<128x128xbf16>, vector<18x128xf32> -> vector<18x128xf32>
    %16 = arith.addf %11, %15 : vector<18x128xf32>
    %17 = vector.extract_strided_slice %2 {offsets = [3, 0], sizes = [18, 128], strides = [1, 1]} : vector<24x128xbf16> to vector<18x128xbf16>
    %c3 = arith.constant 3 : index
    %c0_12 = arith.constant 0 : index
    %c0_13 = arith.constant 0 : index
    %18 = vector.load %arg3[%c3, %c0_12, %c0_13] : memref<5x128x128xbf16, #tpu.memory_space<vmem>>, vector<1x128x128xbf16>
    %19 = vector.shape_cast %18 : vector<1x128x128xbf16> to vector<128x128xbf16>
    %cst_14 = arith.constant dense<0.000000e+00> : vector<18x128xf32>
    %20 = tpu.matmul %17, %19, %cst_14 {dimension_numbers = #tpu.dot_dimension_numbers<[1], [0], [0], [1], [0, 0, 1, 1], [], []>} : vector<18x128xbf16>, vector<128x128xbf16>, vector<18x128xf32> -> vector<18x128xf32>
    %21 = arith.addf %16, %20 : vector<18x128xf32>
    %22 = vector.extract_strided_slice %2 {offsets = [4, 0], sizes = [18, 128], strides = [1, 1]} : vector<24x128xbf16> to vector<18x128xbf16>
    %c4 = arith.constant 4 : index
    %c0_15 = arith.constant 0 : index
    %c0_16 = arith.constant 0 : index
    %23 = vector.load %arg3[%c4, %c0_15, %c0_16] : memref<5x128x128xbf16, #tpu.memory_space<vmem>>, vector<1x128x128xbf16>
    %24 = vector.shape_cast %23 : vector<1x128x128xbf16> to vector<128x128xbf16>
    %cst_17 = arith.constant dense<0.000000e+00> : vector<18x128xf32>
    %25 = tpu.matmul %22, %24, %cst_17 {dimension_numbers = #tpu.dot_dimension_numbers<[1], [0], [0], [1], [0, 0, 1, 1], [], []>} : vector<18x128xbf16>, vector<128x128xbf16>, vector<18x128xf32> -> vector<18x128xf32>
    %26 = arith.addf %21, %25 : vector<18x128xf32>
    %c0_18 = arith.constant 0 : index
    %c0_19 = arith.constant 0 : index
    %27 = vector.load %arg4[%c0_18, %c0_19] : memref<1x128xf32, #tpu.memory_space<vmem>>, vector<1x128xf32>
    %28 = vector.broadcast %27 : vector<1x128xf32> to vector<18x128xf32>
    %29 = arith.addf %26, %28 : vector<18x128xf32>
    %cst_20 = arith.constant 0.000000e+00 : f32
    %30 = vector.broadcast %cst_20 : f32 to vector<18x128xf32>
    %31 = arith.maximumf %29, %30 : vector<18x128xf32>
    %32 = tpu.iota {dimensions = array<i32: 0>} : vector<18x1xi32>
    %c16_i32 = arith.constant 16 : i32
    %33 = arith.muli %arg1, %c16_i32 : i32
    %c1_i32 = arith.constant 1 : i32
    %34 = arith.subi %33, %c1_i32 : i32
    %35 = vector.broadcast %34 : i32 to vector<18x1xi32>
    %36 = arith.addi %35, %32 : vector<18x1xi32>
    %c0_i32 = arith.constant 0 : i32
    %37 = vector.broadcast %c0_i32 : i32 to vector<18x1xi32>
    %38 = arith.cmpi sge, %36, %37 : vector<18x1xi32>
    %c12_i32 = arith.constant 12 : i32
    %39 = vector.broadcast %c12_i32 : i32 to vector<18x1xi32>
    %40 = arith.cmpi slt, %36, %39 : vector<18x1xi32>
    %41 = arith.andi %38, %40 : vector<18x1xi1>
    %cst_21 = arith.constant 0.000000e+00 : f32
    %42 = vector.shape_cast %41 : vector<18x1xi1> to vector<18x1xi1>
    %43 = vector.broadcast %42 : vector<18x1xi1> to vector<18x128xi1>
    %44 = vector.broadcast %cst_21 : f32 to vector<18x128xf32>
    %45 = arith.select %43, %31, %44 : vector<18x128xi1>, vector<18x128xf32>
    %46 = arith.truncf %45 : vector<18x128xf32> to vector<18x128xbf16>
    %c0_22 = arith.constant 0 : index
    %c0_23 = arith.constant 0 : index
    %c0_24 = arith.constant 0 : index
    %47 = vector.load %arg5[%c0_22, %c0_23, %c0_24] : memref<3x128x128xbf16, #tpu.memory_space<vmem>>, vector<1x128x128xbf16>
    %48 = vector.shape_cast %47 : vector<1x128x128xbf16> to vector<128x128xbf16>
    %cst_25 = arith.constant dense<0.000000e+00> : vector<18x128xf32>
    %49 = tpu.matmul %46, %48, %cst_25 {dimension_numbers = #tpu.dot_dimension_numbers<[1], [0], [0], [1], [0, 0, 1, 1], [], []>} : vector<18x128xbf16>, vector<128x128xbf16>, vector<18x128xf32> -> vector<18x128xf32>
    %c1_26 = arith.constant 1 : index
    %c0_27 = arith.constant 0 : index
    %c0_28 = arith.constant 0 : index
    %50 = vector.load %arg5[%c1_26, %c0_27, %c0_28] : memref<3x128x128xbf16, #tpu.memory_space<vmem>>, vector<1x128x128xbf16>
    %51 = vector.shape_cast %50 : vector<1x128x128xbf16> to vector<128x128xbf16>
    %cst_29 = arith.constant dense<0.000000e+00> : vector<18x128xf32>
    %52 = tpu.matmul %46, %51, %cst_29 {dimension_numbers = #tpu.dot_dimension_numbers<[1], [0], [0], [1], [0, 0, 1, 1], [], []>} : vector<18x128xbf16>, vector<128x128xbf16>, vector<18x128xf32> -> vector<18x128xf32>
    %c2_30 = arith.constant 2 : index
    %c0_31 = arith.constant 0 : index
    %c0_32 = arith.constant 0 : index
    %53 = vector.load %arg5[%c2_30, %c0_31, %c0_32] : memref<3x128x128xbf16, #tpu.memory_space<vmem>>, vector<1x128x128xbf16>
    %54 = vector.shape_cast %53 : vector<1x128x128xbf16> to vector<128x128xbf16>
    %cst_33 = arith.constant dense<0.000000e+00> : vector<18x128xf32>
    %55 = tpu.matmul %46, %54, %cst_33 {dimension_numbers = #tpu.dot_dimension_numbers<[1], [0], [0], [1], [0, 0, 1, 1], [], []>} : vector<18x128xbf16>, vector<128x128xbf16>, vector<18x128xf32> -> vector<18x128xf32>
    %56 = vector.extract_strided_slice %49 {offsets = [0, 0], sizes = [16, 128], strides = [1, 1]} : vector<18x128xf32> to vector<16x128xf32>
    %57 = vector.extract_strided_slice %52 {offsets = [1, 0], sizes = [16, 128], strides = [1, 1]} : vector<18x128xf32> to vector<16x128xf32>
    %58 = arith.addf %56, %57 : vector<16x128xf32>
    %59 = vector.extract_strided_slice %55 {offsets = [2, 0], sizes = [16, 128], strides = [1, 1]} : vector<18x128xf32> to vector<16x128xf32>
    %60 = arith.addf %58, %59 : vector<16x128xf32>
    %c0_34 = arith.constant 0 : index
    %c0_35 = arith.constant 0 : index
    %61 = vector.load %arg6[%c0_34, %c0_35] : memref<1x128xf32, #tpu.memory_space<vmem>>, vector<1x128xf32>
    %62 = vector.broadcast %61 : vector<1x128xf32> to vector<16x128xf32>
    %63 = arith.addf %60, %62 : vector<16x128xf32>
    %64 = vector.extract_strided_slice %1 {offsets = [3, 0], sizes = [16, 128], strides = [1, 1]} : vector<24x128xf32> to vector<16x128xf32>
    %65 = arith.addf %63, %64 : vector<16x128xf32>
    %c0_36 = arith.constant 0 : index
    %c0_37 = arith.constant 0 : index
    %c0_38 = arith.constant 0 : index
    %c0_39 = arith.constant 0 : index
    %66 = vector.load %arg7[%c0_36, %c0_37, %c0_38, %c0_39] : memref<1x1x16x128xf32, #tpu.memory_space<vmem>>, vector<1x1x16x128xf32>
    %67 = vector.shape_cast %66 : vector<1x1x16x128xf32> to vector<16x128xf32>
    %68 = vector.shape_cast %65 : vector<16x128xf32> to vector<1x1x16x128xf32>
    tpu.vector_store %arg7[%c0_36, %c0_37, %c0_38, %c0_39], %68 {strides = array<i32>} : memref<1x1x16x128xf32, #tpu.memory_space<vmem>>, vector<1x1x16x128xf32>,
    return
  }
  func.func @transform_0(%arg0: i32, %arg1: i32) -> (i32, i32, i32, i32) {
    %c0_i32 = arith.constant 0 : i32
    %c0_i32_0 = arith.constant 0 : i32
    %c0_i32_1 = arith.constant 0 : i32
    return %arg0, %arg1, %c0_i32, %c0_i32_0 : i32, i32, i32, i32
  }
  func.func @transform_1(%arg0: i32, %arg1: i32) -> (i32, i32, i32) {
    %c0_i32 = arith.constant 0 : i32
    %c0_i32_0 = arith.constant 0 : i32
    %c0_i32_1 = arith.constant 0 : i32
    %c0_i32_2 = arith.constant 0 : i32
    return %c0_i32, %c0_i32_0, %c0_i32_1 : i32, i32, i32
  }
  func.func @transform_2(%arg0: i32, %arg1: i32) -> (i32, i32) {
    %c0_i32 = arith.constant 0 : i32
    %c0_i32_0 = arith.constant 0 : i32
    %c0_i32_1 = arith.constant 0 : i32
    return %c0_i32, %c0_i32_0 : i32, i32
  }
  func.func @transform_3(%arg0: i32, %arg1: i32) -> (i32, i32, i32) {
    %c0_i32 = arith.constant 0 : i32
    %c0_i32_0 = arith.constant 0 : i32
    %c0_i32_1 = arith.constant 0 : i32
    %c0_i32_2 = arith.constant 0 : i32
    return %c0_i32, %c0_i32_0, %c0_i32_1 : i32, i32, i32
  }
  func.func @transform_4(%arg0: i32, %arg1: i32) -> (i32, i32) {
    %c0_i32 = arith.constant 0 : i32
    %c0_i32_0 = arith.constant 0 : i32
    %c0_i32_1 = arith.constant 0 : i32
    return %c0_i32, %c0_i32_0 : i32, i32
  }
  func.func @transform_5(%arg0: i32, %arg1: i32) -> (i32, i32, i32, i32) {
    %c0_i32 = arith.constant 0 : i32
    %c0_i32_0 = arith.constant 0 : i32
    %c0_i32_1 = arith.constant 0 : i32
    return %arg0, %arg1, %c0_i32, %c0_i32_0 : i32, i32, i32, i32
  }
}

module attributes {stable_mosaic.version = 11 : i64} {
  func.func @kernel(%arg0: i32, %arg1: i32, %arg2: memref<1x1x24x128xf32, #tpu.memory_space<vmem>>, %arg3: memref<5x128x128xbf16, #tpu.memory_space<vmem>>, %arg4: memref<1x128xf32, #tpu.memory_space<vmem>>, %arg5: memref<3x128x128xbf16, #tpu.memory_space<vmem>>, %arg6: memref<1x128xf32, #tpu.memory_space<vmem>>, %arg7: memref<1x1x16x128xf32, #tpu.memory_space<vmem>>) attributes {dimension_semantics = [#tpu.dimension_semantics<parallel>, #tpu.dimension_semantics<parallel>], iteration_bounds = array<i64: 2, 1>, scalar_prefetch = 0 : i64, scratch_operands = 0 : i64, tpu.core_type = #tpu.core_type<tc>, window_params = [{transform_indices = @transform_0, window_bounds = array<i64: 1, 1, 24, 128>}, {pipeline_mode = #tpu.pipeline_mode<synchronous>, transform_indices = @transform_1, window_bounds = array<i64: 5, 128, 128>}, {pipeline_mode = #tpu.pipeline_mode<synchronous>, transform_indices = @transform_2, window_bounds = array<i64: 1, 128>}, {pipeline_mode = #tpu.pipeline_mode<synchronous>, transform_indices = @transform_3, window_bounds = array<i64: 3, 128, 128>}, {pipeline_mode = #tpu.pipeline_mode<synchronous>, transform_indices = @transform_4, window_bounds = array<i64: 1, 128>}, {transform_indices = @transform_5, window_bounds = array<i64: 1, 1, 16, 128>}]} {
    %c0 = arith.constant 0 : index
    %c0_0 = arith.constant 0 : index
    %c0_1 = arith.constant 0 : index
    %c0_2 = arith.constant 0 : index
    %0 = vector.load %arg2[%c0, %c0_0, %c0_1, %c0_2] : memref<1x1x24x128xf32, #tpu.memory_space<vmem>>, vector<1x1x24x128xf32>
    %1 = vector.shape_cast %0 : vector<1x1x24x128xf32> to vector<24x128xf32>
    %2 = arith.truncf %1 : vector<24x128xf32> to vector<24x128xbf16>
    %3 = vector.extract_strided_slice %2 {offsets = [0, 0], sizes = [18, 128], strides = [1, 1]} : vector<24x128xbf16> to vector<18x128xbf16>
    %c0_3 = arith.constant 0 : index
    %c0_4 = arith.constant 0 : index
    %c0_5 = arith.constant 0 : index
    %4 = vector.load %arg3[%c0_3, %c0_4, %c0_5] : memref<5x128x128xbf16, #tpu.memory_space<vmem>>, vector<1x128x128xbf16>
    %5 = vector.shape_cast %4 : vector<1x128x128xbf16> to vector<128x128xbf16>
    %cst = arith.constant dense<0.000000e+00> : vector<18x128xf32>
    %6 = tpu.matmul %3, %5, %cst {dimension_numbers = #tpu.dot_dimension_numbers<[1], [0], [0], [1], [0, 0, 1, 1], [], []>} : vector<18x128xbf16>, vector<128x128xbf16>, vector<18x128xf32> -> vector<18x128xf32>
    %7 = vector.extract_strided_slice %2 {offsets = [1, 0], sizes = [18, 128], strides = [1, 1]} : vector<24x128xbf16> to vector<18x128xbf16>
    %c1 = arith.constant 1 : index
    %c0_6 = arith.constant 0 : index
    %c0_7 = arith.constant 0 : index
    %8 = vector.load %arg3[%c1, %c0_6, %c0_7] : memref<5x128x128xbf16, #tpu.memory_space<vmem>>, vector<1x128x128xbf16>
    %9 = vector.shape_cast %8 : vector<1x128x128xbf16> to vector<128x128xbf16>
    %cst_8 = arith.constant dense<0.000000e+00> : vector<18x128xf32>
    %10 = tpu.matmul %7, %9, %cst_8 {dimension_numbers = #tpu.dot_dimension_numbers<[1], [0], [0], [1], [0, 0, 1, 1], [], []>} : vector<18x128xbf16>, vector<128x128xbf16>, vector<18x128xf32> -> vector<18x128xf32>
    %11 = arith.addf %6, %10 : vector<18x128xf32>
    %12 = vector.extract_strided_slice %2 {offsets = [2, 0], sizes = [18, 128], strides = [1, 1]} : vector<24x128xbf16> to vector<18x128xbf16>
    %c2 = arith.constant 2 : index
    %c0_9 = arith.constant 0 : index
    %c0_10 = arith.constant 0 : index
    %13 = vector.load %arg3[%c2, %c0_9, %c0_10] : memref<5x128x128xbf16, #tpu.memory_space<vmem>>, vector<1x128x128xbf16>
    %14 = vector.shape_cast %13 : vector<1x128x128xbf16> to vector<128x128xbf16>
    %cst_11 = arith.constant dense<0.000000e+00> : vector<18x128xf32>
    %15 = tpu.matmul %12, %14, %cst_11 {dimension_numbers = #tpu.dot_dimension_numbers<[1], [0], [0], [1], [0, 0, 1, 1], [], []>} : vector<18x128xbf16>, vector<128x128xbf16>, vector<18x128xf32> -> vector<18x128xf32>
    %16 = arith.addf %11, %15 : vector<18x128xf32>
    %17 = vector.extract_strided_slice %2 {offsets = [3, 0], sizes = [18, 128], strides = [1, 1]} : vector<24x128xbf16> to vector<18x128xbf16>
    %c3 = arith.constant 3 : index
    %c0_12 = arith.constant 0 : index
    %c0_13 = arith.constant 0 : index
    %18 = vector.load %arg3[%c3, %c0_12, %c0_13] : memref<5x128x128xbf16, #tpu.memory_space<vmem>>, vector<1x128x128xbf16>
    %19 = vector.shape_cast %18 : vector<1x128x128xbf16> to vector<128x128xbf16>
    %cst_14 = arith.constant dense<0.000000e+00> : vector<18x128xf32>
    %20 = tpu.matmul %17, %19, %cst_14 {dimension_numbers = #tpu.dot_dimension_numbers<[1], [0], [0], [1], [0, 0, 1, 1], [], []>} : vector<18x128xbf16>, vector<128x128xbf16>, vector<18x128xf32> -> vector<18x128xf32>
    %21 = arith.addf %16, %20 : vector<18x128xf32>
    %22 = vector.extract_strided_slice %2 {offsets = [4, 0], sizes = [18, 128], strides = [1, 1]} : vector<24x128xbf16> to vector<18x128xbf16>
    %c4 = arith.constant 4 : index
    %c0_15 = arith.constant 0 : index
    %c0_16 = arith.constant 0 : index
    %23 = vector.load %arg3[%c4, %c0_15, %c0_16] : memref<5x128x128xbf16, #tpu.memory_space<vmem>>, vector<1x128x128xbf16>
    %24 = vector.shape_cast %23 : vector<1x128x128xbf16> to vector<128x128xbf16>
    %cst_17 = arith.constant dense<0.000000e+00> : vector<18x128xf32>
    %25 = tpu.matmul %22, %24, %cst_17 {dimension_numbers = #tpu.dot_dimension_numbers<[1], [0], [0], [1], [0, 0, 1, 1], [], []>} : vector<18x128xbf16>, vector<128x128xbf16>, vector<18x128xf32> -> vector<18x128xf32>
    %26 = arith.addf %21, %25 : vector<18x128xf32>
    %c0_18 = arith.constant 0 : index
    %c0_19 = arith.constant 0 : index
    %27 = vector.load %arg4[%c0_18, %c0_19] : memref<1x128xf32, #tpu.memory_space<vmem>>, vector<1x128xf32>
    %28 = vector.broadcast %27 : vector<1x128xf32> to vector<18x128xf32>
    %29 = arith.addf %26, %28 : vector<18x128xf32>
    %cst_20 = arith.constant 0.000000e+00 : f32
    %30 = vector.broadcast %cst_20 : f32 to vector<18x128xf32>
    %31 = arith.maximumf %29, %30 : vector<18x128xf32>
    %32 = tpu.iota {dimensions = array<i32: 0>} : vector<18x1xi32>
    %c16_i32 = arith.constant 16 : i32
    %33 = arith.muli %arg1, %c16_i32 : i32
    %c1_i32 = arith.constant 1 : i32
    %34 = arith.subi %33, %c1_i32 : i32
    %35 = vector.broadcast %34 : i32 to vector<18x1xi32>
    %36 = arith.addi %35, %32 : vector<18x1xi32>
    %c0_i32 = arith.constant 0 : i32
    %37 = vector.broadcast %c0_i32 : i32 to vector<18x1xi32>
    %38 = arith.cmpi sge, %36, %37 : vector<18x1xi32>
    %c12_i32 = arith.constant 12 : i32
    %39 = vector.broadcast %c12_i32 : i32 to vector<18x1xi32>
    %40 = arith.cmpi slt, %36, %39 : vector<18x1xi32>
    %41 = arith.andi %38, %40 : vector<18x1xi1>
    %cst_21 = arith.constant 0.000000e+00 : f32
    %42 = vector.shape_cast %41 : vector<18x1xi1> to vector<18x1xi1>
    %43 = vector.broadcast %42 : vector<18x1xi1> to vector<18x128xi1>
    %44 = vector.broadcast %cst_21 : f32 to vector<18x128xf32>
    %45 = arith.select %43, %31, %44 : vector<18x128xi1>, vector<18x128xf32>
    %46 = arith.truncf %45 : vector<18x128xf32> to vector<18x128xbf16>
    %c0_22 = arith.constant 0 : index
    %c0_23 = arith.constant 0 : index
    %c0_24 = arith.constant 0 : index
    %47 = vector.load %arg5[%c0_22, %c0_23, %c0_24] : memref<3x128x128xbf16, #tpu.memory_space<vmem>>, vector<1x128x128xbf16>
    %48 = vector.shape_cast %47 : vector<1x128x128xbf16> to vector<128x128xbf16>
    %cst_25 = arith.constant dense<0.000000e+00> : vector<18x128xf32>
    %49 = tpu.matmul %46, %48, %cst_25 {dimension_numbers = #tpu.dot_dimension_numbers<[1], [0], [0], [1], [0, 0, 1, 1], [], []>} : vector<18x128xbf16>, vector<128x128xbf16>, vector<18x128xf32> -> vector<18x128xf32>
    %c1_26 = arith.constant 1 : index
    %c0_27 = arith.constant 0 : index
    %c0_28 = arith.constant 0 : index
    %50 = vector.load %arg5[%c1_26, %c0_27, %c0_28] : memref<3x128x128xbf16, #tpu.memory_space<vmem>>, vector<1x128x128xbf16>
    %51 = vector.shape_cast %50 : vector<1x128x128xbf16> to vector<128x128xbf16>
    %cst_29 = arith.constant dense<0.000000e+00> : vector<18x128xf32>
    %52 = tpu.matmul %46, %51, %cst_29 {dimension_numbers = #tpu.dot_dimension_numbers<[1], [0], [0], [1], [0, 0, 1, 1], [], []>} : vector<18x128xbf16>, vector<128x128xbf16>, vector<18x128xf32> -> vector<18x128xf32>
    %c2_30 = arith.constant 2 : index
    %c0_31 = arith.constant 0 : index
    %c0_32 = arith.constant 0 : index
    %53 = vector.load %arg5[%c2_30, %c0_31, %c0_32] : memref<3x128x128xbf16, #tpu.memory_space<vmem>>, vector<1x128x128xbf16>
    %54 = vector.shape_cast %53 : vector<1x128x128xbf16> to vector<128x128xbf16>
    %cst_33 = arith.constant dense<0.000000e+00> : vector<18x128xf32>
    %55 = tpu.matmul %46, %54, %cst_33 {dimension_numbers = #tpu.dot_dimension_numbers<[1], [0], [0], [1], [0, 0, 1, 1], [], []>} : vector<18x128xbf16>, vector<128x128xbf16>, vector<18x128xf32> -> vector<18x128xf32>
    %56 = vector.extract_strided_slice %49 {offsets = [0, 0], sizes = [16, 128], strides = [1, 1]} : vector<18x128xf32> to vector<16x128xf32>
    %57 = vector.extract_strided_slice %52 {offsets = [1, 0], sizes = [16, 128], strides = [1, 1]} : vector<18x128xf32> to vector<16x128xf32>
    %58 = arith.addf %56, %57 : vector<16x128xf32>
    %59 = vector.extract_strided_slice %55 {offsets = [2, 0], sizes = [16, 128], strides = [1, 1]} : vector<18x128xf32> to vector<16x128xf32>
    %60 = arith.addf %58, %59 : vector<16x128xf32>
    %c0_34 = arith.constant 0 : index
    %c0_35 = arith.constant 0 : index
    %61 = vector.load %arg6[%c0_34, %c0_35] : memref<1x128xf32, #tpu.memory_space<vmem>>, vector<1x128xf32>
    %62 = vector.broadcast %61 : vector<1x128xf32> to vector<16x128xf32>
    %63 = arith.addf %60, %62 : vector<16x128xf32>
    %64 = vector.extract_strided_slice %1 {offsets = [3, 0], sizes = [16, 128], strides = [1, 1]} : vector<24x128xf32> to vector<16x128xf32>
    %65 = arith.addf %63, %64 : vector<16x128xf32>
    %c0_36 = arith.constant 0 : index
    %c0_37 = arith.constant 0 : index
    %c0_38 = arith.constant 0 : index
    %c0_39 = arith.constant 0 : index
    %66 = vector.load %arg7[%c0_36, %c0_37, %c0_38, %c0_39] : memref<1x1x16x128xf32, #tpu.memory_space<vmem>>, vector<1x1x16x128xf32>
    %67 = vector.shape_cast %66 : vector<1x1x16x128xf32> to vector<16x128xf32>
    %68 = vector.shape_cast %65 : vector<16x128xf32> to vector<1x1x16x128xf32>
    tpu.vector_store %arg7[%c0_36, %c0_37, %c0_38, %c0_39], %68 {strides = array<i32>} : memref<1x1x16x128xf32, #tpu.memory_space<vmem>>, vector<1x1x16x128xf32>,
    return
  }
  func.func @transform_0(%arg0: i32, %arg1: i32) -> (i32, i32, i32, i32) {
    %c0_i32 = arith.constant 0 : i32
    %c0_i32_0 = arith.constant 0 : i32
    %c0_i32_1 = arith.constant 0 : i32
    return %arg0, %arg1, %c0_i32, %c0_i32_0 : i32, i32, i32, i32
  }
  func.func @transform_1(%arg0: i32, %arg1: i32) -> (i32, i32, i32) {
    %c0_i32 = arith.constant 0 : i32
    %c0_i32_0 = arith.constant 0 : i32
    %c0_i32_1 = arith.constant 0 : i32
    %c0_i32_2 = arith.constant 0 : i32
    return %c0_i32, %c0_i32_0, %c0_i32_1 : i32, i32, i32
  }
  func.func @transform_2(%arg0: i32, %arg1: i32) -> (i32, i32) {
    %c0_i32 = arith.constant 0 : i32
    %c0_i32_0 = arith.constant 0 : i32
    %c0_i32_1 = arith.constant 0 : i32
    return %c0_i32, %c0_i32_0 : i32, i32
  }
  func.func @transform_3(%arg0: i32, %arg1: i32) -> (i32, i32, i32) {
    %c0_i32 = arith.constant 0 : i32
    %c0_i32_0 = arith.constant 0 : i32
    %c0_i32_1 = arith.constant 0 : i32
    %c0_i32_2 = arith.constant 0 : i32
    return %c0_i32, %c0_i32_0, %c0_i32_1 : i32, i32, i32
  }
  func.func @transform_4(%arg0: i32, %arg1: i32) -> (i32, i32) {
    %c0_i32 = arith.constant 0 : i32
    %c0_i32_0 = arith.constant 0 : i32
    %c0_i32_1 = arith.constant 0 : i32
    return %c0_i32, %c0_i32_0 : i32, i32
  }
  func.func @transform_5(%arg0: i32, %arg1: i32) -> (i32, i32, i32, i32) {
    %c0_i32 = arith.constant 0 : i32
    %c0_i32_0 = arith.constant 0 : i32
    %c0_i32_1 = arith.constant 0 : i32
    return %arg0, %arg1, %c0_i32, %c0_i32_0 : i32, i32, i32, i32
  }
}

</mosaic_0001>

<bundles_post_ra>
// kernel: tpu_custom_call.1
= control target key start
LH: loop header
LB: loop body
LE: loop exit
PB: predicated region body
PF: predicated region fallthrough
CT: control target
= control target key end

     0   :  { %s2087_s0 = inlined_call_operand.hbm [shape: f32[2,1,24,128], index: 0, kind: input, shape index: {}]   ;;  %s2088_s1 = inlined_call_operand.hbm [shape: bf16[5,128,128], index: 1, kind: input, shape index: {}]   ;;  %s2089_s2 = inlined_call_operand.vmem [shape: f32[1,128], index: 2, kind: input, shape index: {}]   ;;  %s2090_s3 = inlined_call_operand.hbm [shape: bf16[3,128,128], index: 3, kind: input, shape index: {}]   ;;  %s2091_s4 = inlined_call_operand.vmem [shape: f32[1,128], index: 4, kind: input, shape index: {}]   ;;  %s2092_s5 = inlined_call_operand.hbm [shape: f32[2,1,16,128], index: 5, kind: output, shape index: {}]  }
   0x1   :  { %2093 = sst [smem:[#allocation12_spill]] %s2088_s1 }
   0x2   :  { %2094 = sst [smem:[#allocation13_spill]] %s2090_s3 }
   0x3   :  { %10 = vsyncpa [#allocation3], 0 }
   0x4   :  { %12 = vsyncpa [#allocation3 + $0x1], 0 }
   0x5   :  { %13 = vsyncpa [#allocation6], 0 }
   0x6   :  { %14 = vsyncpa [#allocation4], 0 }
   0x7   :  { %16 = vsyncpa [#allocation4 + $0x1], 0  ;;  %s1891_s18 = smov 0   ;;  %s1893_s19 = smov 0  }
   0x8   :  { %s1895_s20 = smov 0   ;;  %s1897_s21 = smov 0  }
   0x9   :  { %s1899_s22 = smov 0   ;;  %s1901_s23 = smov 0  }
   0xa LB: > { %s1233_s24 = sadd.s32 4294967295, %s1850_s23   ;;  %s1234_s25 = sadd.s32 4294967294, %s1850_s23   ;;  %s1850_s23 = sphi %s1901_s23, %s22_s23   ;;  %s1846_s22 = sphi %s1899_s22, %s2107_s22   ;;  %s1842_s21 = sphi %s1897_s21, %s2106_s21   ;;  %s1838_s20 = sphi %s1895_s20, %s2105_s20   ;;  %s1834_s19 = sphi %s1893_s19, %s2104_s19   ;;  %s1830_s18 = sphi %s1891_s18, %s2103_s18  }
   0xb   : > { %p56_p0 = scmp.ne.s32.totalorder %s1834_s19, %s1830_s18  ;;  %p1925_p1 = scmp.eq.s32.totalorder %s1233_s24, 0 }
   0xc   : > { %p1929_p2 = scmp.eq.s32.totalorder %s1233_s24, 1  ;;  %p172_p3 = scmp.eq.s32.totalorder %s1234_s25, 1 }
   0xd   : > { %p1935_p4 = por %p1925_p1, %p56_p0  ;;  %p1235_p5 = scmp.ge.s32.totalorder %s1850_s23, 1 }
   0xe   : > { %p1940_p6 = por %p172_p3, %p56_p0  ;;  %p179_p7 = scmp.lt.s32.totalorder %s1850_s23, 3 }
   0xf   : > { %s2099_s1 = sld [smem:[#allocation12_spill]]  ;;  %s1852_s9 = smov [#allocation5]  }
  0x10   : > { %p1948_p8 = pnand %p1235_p5, %p179_p7  ;;  %s192_s10 = sshll.u32 %s1852_s9, 4  ;;  %s193_s10 = int_to_ptr.vmem [resolvable:$true] %s192_s10 }
  0x11   : > { %p1238_p11 = scmp.ge.s32.totalorder %s1850_s23, 2  ;;  %s2101_s3 = sld [smem:[#allocation13_spill]] }
  0x12   : > { %p1594_p9 = pneg %p1948_p8  ;;  %s1853_s14 = smov 64  }
  0x13   : > { %s1854_s15 = smov 4   ;;  %s1855_s16 = smov [#allocation7]  }
  0x14   : > { %p1595_p10 = pnand %p1594_p9, %p1925_p1  ;;  %s209_s17 = sshll.u32 %s1855_s16, 4  ;;  %s210_s17 = int_to_ptr.vmem [resolvable:$true] %s209_s17 }
  0x15   : > { %s190_s7 = sshll.u32 %s2099_s1, 4  ;;  %s34_s24 = sadd.s32 1, %s1846_s22  ;;  %s191_s7 = int_to_ptr.hbm [resolvable:$true] %s190_s7 }
  0x16   : > { %1597 = dma.hbm_to_vmem [thread:$0]  (!%p1595_p10), %s191_s7, 5120, %s193_s10, [#allocation6], %s1853_s14, %s1853_s14, %s1854_s15  }
  0x17   : > { %s207_s13 = sshll.u32 %s2101_s3, 4  ;;  %s43_s25 = sadd.s32 1, %s1838_s20  ;;  %s208_s13 = int_to_ptr.hbm [resolvable:$true] %s207_s13 }
  0x18   : > { %1600 = dma.hbm_to_vmem [thread:$0]  (!%p1595_p10), %s208_s13, 3072, %s210_s17, [#allocation6], %s1853_s14, %s1853_s14, %s1854_s15  }
  0x19   : > { %p36_p12 = scmp.ge.s32.totalorder %s34_s24, 2  ;;  %p50_p13 = scmp.ne.s32.totalorder %s1838_s20, %s1834_s19 }
  0x1a   : > { %p51_p0 = scmp.eq.s32.totalorder %s1850_s23, 0  ;;  %p1611_p3 = scmp.lt.s32.totalorder %s1850_s23, 2 }
  0x1b   : > { %s2109_s24 = smov (%p36_p12, %s34_s24), 0  ;;  %p1970_p7 = por %p1929_p2, %p50_p13 }
  0x1c   : > { %p52_p5 = por %p51_p0, %p50_p13  ;;  %s38_s6 = ssub.s32 %s1846_s22, %s2109_s24 }
  0x1d   : > { %s226_s7 = sand.u32 1, %s1838_s20   ;;  %p41_p9 = scmp.eq.s32.totalorder %s38_s6, 0 }
  0x1e   : > { %s1579_s9 = smul.u32 24, %s226_s7  ;;  %p1602_p10 = pnand %p1611_p3, %p52_p5 }
  0x1f   : > { %s1978_s10 = scalar_select %p41_p9, %s1838_s20, %s43_s25  }
  0x20   : > { %s1580_s11 = smul.u32 24, %s1846_s22  ;;  %s230_s12 = scalar_lea.vmem [#allocation2], %s1579_s9 }
  0x21   : > { %s240_s13 = sshll.u32 %s230_s12, 4  ;;  %s227_s17 = scalar_lea.sflag [#allocation3], %s226_s7  ;;  %s241_s13 = int_to_ptr.vmem [resolvable:$true] %s240_s13 }
  0x22   : > { %s237_s16 = scalar_lea.hbm %s2087_s0, %s1580_s11  ;;  %s1856_s1 = smov 128  }
  0x23   : > { %s238_s27 = sshll.u32 %s237_s16, 4  ;;  %s1857_s3 = smov 8   ;;  %s239_s27 = int_to_ptr.hbm [resolvable:$true] %s238_s27 }
  0x24   : > { %1604 = dma.hbm_to_vmem [thread:$0]  (!%p1602_p10), %s239_s27, 384, %s241_s13, %s227_s17, %s1856_s1, %s1856_s1, %s1857_s3  }
  0x25   : > { %252 = sbr.rel (%p1948_p8) target bundleno = 414 (0x19e), region = 40  ;;  %s1987_s25 = sand.u32 (!%p1948_p8), 1, %s1834_s19  }
  0x26   : > { %s1581_s6 = smul.u32 (!%p1948_p8), 24, %s1987_s25  ;;  %s255_s9 = scalar_lea.sflag (!%p1948_p8), [#allocation3], %s1987_s25 }
  0x28   : > { %s1991_s12 = scalar_lea.vmem (!%p1948_p8), [#allocation2], %s1581_s6 }
  0x2a   : > { %1817 = dma.done.wait (%p1935_p4), %s255_s9, 384  }
  0x2b   : > { %1819 = vsyncadd (%p1935_p4), %s255_s9, 4294966912 }
  0x2c   : > { %1821 = dma.done.wait (%p1925_p1), [#allocation6], 8192  }
  0x2d   : > { %1823 = vsyncadd (%p1925_p1), [#allocation6], 4294959104  ;;  %v1529_v0 = vld [vmem:[#allocation5 + $0x78] sm:$0xff]  ;;  %v1528_v4 = vld [vmem:[#allocation5 + $0x70] sm:$0xff]  ;;  %vm343_vm0 = vsmask.f32 7424 }
  0x2e   : > { %v1521_v1 = vld [vmem:[#allocation5 + $0x38] sm:$0xff]  ;;  %409 = vmatpush.bf16.msra.mxu0 %v1529_v0  ;;  %v1520_v5 = vld [vmem:[#allocation5 + $0x30] sm:$0xff]  ;;  %v1527_v8 = vld [vmem:[#allocation5 + $0x68] sm:$0xff]  ;;  %vm512_vm1 = vcmask 1046528   ;;  %vm604_vm2 = vsmask.f32 6400 }
  0x2f   : > { %v1537_v2 = vld [vmem:[#allocation5 + $0xb8] sm:$0xff]  ;;  %477 = vmatpush.bf16.msra.mxu1 %v1521_v1  ;;  %v1536_v6 = vld [vmem:[#allocation5 + $0xb0] sm:$0xff]  ;;  %v1519_v9 = vld [vmem:[#allocation5 + $0x28] sm:$0xff]  ;;  %vm700_vm3 = vcmask 1045504   ;;  %vm1097_vm7 = vcmask 1044480   ;;  %s1243_s8 = sshll.u32 %s1987_s25, 4 }
  0x30   : > { %v1545_v3 = vld [vmem:[#allocation5 + $0xf8] sm:$0xff]  ;;  %566 = vmatpush.bf16.msra.mxu2 %v1537_v2  ;;  %v1544_v7 = vld [vmem:[#allocation5 + $0xf0] sm:$0xff]  ;;  %v1535_v10 = vld [vmem:[#allocation5 + $0xa8] sm:$0xff]  ;;  %s1578_s7 = sshll.u32 %s1842_s21, 4  ;;  %s295_s15 = scalar_lea.vmem [#allocation8], %s1243_s8 }
  0x31   : > { %662 = vmatpush.bf16.msra.mxu3 %v1545_v3  ;;  %v1543_v11 = vld [vmem:[#allocation5 + $0xe8] sm:$0xff]  ;;  %v1526_v12 = vld [vmem:[#allocation5 + $0x60] sm:$0xff]  ;;  %v2005_v17 = vld [vmem:[%s1991_s12 + $0x8] sm:$0xff]  ;;  %s1123_s14 = scalar_lea.hbm %s2092_s5, %s1578_s7  ;;  %s1124_s21 = sshll.u32 %s295_s15, 4  ;;  %s1125_s21 = int_to_ptr.vmem [resolvable:$true] %s1124_s21 }
  0x32   : > { %410 = vmatpush.bf16.msra.mxu0 %v1528_v4  ;;  %v1518_v13 = vld [vmem:[#allocation5 + $0x20] sm:$0xff]  ;;  %v2002_v15 = vld [vmem:[%s1991_s12] sm:$0xff]  ;;  %v300_v20 = vpack.c.bf16 %v2005_v17, %v2005_v17  ;;  %v1525_v23 = vld [vmem:[#allocation5 + $0x58] sm:$0xff]  ;;  %s1126_s16 = sshll.u32 %s1123_s14, 4  ;;  %s1110_s27 = scalar_lea.sflag [#allocation4], %s1987_s25  ;;  %s1127_s16 = int_to_ptr.hbm [resolvable:$true] %s1126_s16 }
  0x33   : > { %478 = vmatpush.bf16.msra.mxu1 %v1520_v5  ;;  %v1534_v14 = vld [vmem:[#allocation5 + $0xa0] sm:$0xff]  ;;  %v299_v19 = vpack.c.bf16 %v2002_v15, %v2002_v15  ;;  %v1517_v24 = vld [vmem:[#allocation5 + $0x18] sm:$0xff]  ;;  %v1524_v31 = vld [vmem:[#allocation5 + $0x50] sm:$0xff]  ;;  %s1778_s17 = sshra.s32 %s1127_s16, 4  ;;  %s1784_s1 = scalar_lea.hbm %s2092_s5, 32  ;;  %s1779_s17 = int_to_ptr.hbm [resolvable:$true] %s1778_s17 }
  0x34   : > { %567 = vmatpush.bf16.msra.mxu2 %v1536_v6  ;;  %v1542_v16 = vld [vmem:[#allocation5 + $0xe0] sm:$0xff]  ;;  %v339_v25 = vunpack.c.l.b16 %v300_v20  ;;  %v1533_v27 = vld [vmem:[#allocation5 + $0x98] sm:$0xff]  ;;  %v1516_v32 = vld [vmem:[#allocation5 + $0x10] sm:$0xff]  ;;  %s1780_s6 = scalar_lea.hbm %s1779_s17, 16  ;;  %p1785_p8 = scmp.lt.s32.totalorder %s1779_s17, %s2092_s5 }
  0x35   : > { %663 = vmatpush.bf16.msra.mxu3 %v1544_v7  ;;  %v2008_v18 = vld [vmem:[%s1991_s12 + $0x10] sm:$0xff]  ;;  %v338_v22 = vunpack.c.l.b16 %v299_v19  ;;  %v1532_v34 = vld [vmem:[#allocation5 + $0x90] sm:$0xff]  ;;  %v1523_v39 = vld [vmem:[#allocation5 + $0x48] sm:$0xff]  ;;  %p1781_p1 = scmp.ne.s32.totalorder %s1779_s17, %s1780_s6  ;;  %p1786_p12 = scmp.lt.s32.totalorder %s1784_s1, %s1780_s6 }
  0x36   : > { %411 = vmatpush.bf16.msra.mxu0 %v1527_v8  ;;  %v301_v21 = vpack.c.bf16 %v2008_v18, %v2008_v18  ;;  %v1541_v28 = vld [vmem:[#allocation5 + $0xd8] sm:$0xff]  ;;  %v1540_v35 = vld [vmem:[#allocation5 + $0xd0] sm:$0xff]  ;;  %v1515_v40 = vld [vmem:[#allocation5 + $0x8] sm:$0xff] }
  0x37   : > { %479 = vmatpush.bf16.msra.mxu1 %v1519_v9  ;;  %v2016_v29 = vpack.c.b16 %v339_v25, %v338_v22  ;;  %v1531_v42 = vld [vmem:[#allocation5 + $0x88] sm:$0xff]  ;;  %v1522_v48 = vld [vmem:[#allocation5 + $0x40] sm:$0xff]  ;;  %v1553_v58 = vld [vmem:[#allocation5 + $0x138] sm:$0xff]  ;;  %p1782_p2 = pnand %p1781_p1, %p1970_p7  ;;  %p1787_p13 = por %p1786_p12, %p1785_p8 }
  0x38   : > { %568 = vmatpush.bf16.msra.mxu2 %v1535_v10  ;;  %v340_v26 = vunpack.c.l.b16 %v301_v21  ;;  %v1539_v43 = vld [vmem:[#allocation5 + $0xc8] sm:$0xff]  ;;  %v1514_v49 = vld [vmem:[#allocation5] sm:$0xff]  ;;  %v1552_v62 = vld [vmem:[#allocation5 + $0x130] sm:$0xff] }
  0x39   : > { %664 = vmatpush.bf16.msra.mxu3 %v1543_v11  ;;  %v347_v33 = vshll.u32 %v2016_v29, 16  ;;  %v345_v36 = vshrl.u32 %v2016_v29, 16  ;;  %v1530_v52 = vld [vmem:[#allocation5 + $0x80] sm:$0xff]  ;;  %v513_v54 = vrot.slane %v2016_v29, 1  ;;  %v1551_v63 = vld [vmem:[#allocation5 + $0x128] sm:$0xff]  ;;  %v1549_v1 = vld [vmem:[#allocation5 + $0x118] sm:$0xff]  ;;  %p1783_p4 = pneg %p1782_p2 }
  0x3a   : > { %412 = vmatpush.bf16.msra.mxu0 %v1526_v12  ;;  %v2018_v30 = vpack.c.b16 %v340_v26, %v340_v26  ;;  %v1538_v53 = vld [vmem:[#allocation5 + $0xc0] sm:$0xff]  ;;  %v1548_v3 = vld [vmem:[#allocation5 + $0x110] sm:$0xff]  ;;  %v1547_v4 = vld [vmem:[#allocation5 + $0x108] sm:$0xff]  ;;  %v701_v6 = vrot.slane %v2016_v29, 2 }
  0x3b   : > { %480 = vmatpush.bf16.msra.mxu1 %v1518_v13  ;;  %v349_v41 = vrot.slane %v347_v33, 1  ;;  %v605_v44 = vrot.slane %v345_v36, 1  ;;  %v606_v45 = vrot.slane %v347_v33, 2  ;;  %v1550_v0 = vld [vmem:[#allocation5 + $0x120] sm:$0xff]  ;;  %v1569_v9 = vld [vmem:[#allocation7 + $0x78] sm:$0xff]  ;;  %v1568_v12 = vld [vmem:[#allocation7 + $0x70] sm:$0xff]  ;;  %p1788_p0 = pnand %p1787_p13, %p1783_p4 }
  0x3c   : > { %569 = vmatpush.bf16.msra.mxu2 %v1534_v14  ;;  %v352_v37 = vshll.u32 %v2018_v30, 16  ;;  %v356_v38 = vshrl.u32 %v2018_v30, 16  ;;  %v514_v55 = vrot.slane %v2018_v30, 1  ;;  %v1546_v5 = vld [vmem:[#allocation5 + $0x100] sm:$0xff]  ;;  %v702_v7 = vrot.slane %v2018_v30, 2  ;;  %v1561_v10 = vld [vmem:[#allocation7 + $0x38] sm:$0xff] }
  0x3d   : > { %665 = vmatpush.bf16.msra.mxu3 %v1542_v16  ;;  %v350_v50 = vor.u32 %v349_v41, %v345_v36  ;;  %v607_v56 = vor.u32 %v606_v45, %v605_v44  ;;  %v1577_v11 = vld [vmem:[#allocation7 + $0xb8] sm:$0xff]  ;;  %v1560_v13 = vld [vmem:[#allocation7 + $0x30] sm:$0xff]  ;;  %v1567_v16 = vld [vmem:[#allocation7 + $0x68] sm:$0xff] }
  0x3e   : > { %413 = vmatpush.bf16.msra.mxu0 %v1525_v23  ;;  %v608_v46 = vrot.slane %v356_v38, 1  ;;  %v609_v47 = vrot.slane %v352_v37, 2  ;;  %v354_v51 = vrot.slane %v352_v37, 1  ;;  %v515_v60 = vsel %vm512_vm1, %v513_v54, %v514_v55  ;;  %v1576_v14 = vld [vmem:[#allocation7 + $0xb0] sm:$0xff]  ;;  %v1559_v19 = vld [vmem:[#allocation7 + $0x28] sm:$0xff]  ;;  %v1566_v21 = vld [vmem:[#allocation7 + $0x60] sm:$0xff] }
  0x3f   : > { %481 = vmatpush.bf16.msra.mxu1 %v1517_v24  ;;  %v703_v8 = vsel %vm700_vm3, %v701_v6, %v702_v7  ;;  %v1575_v20 = vld [vmem:[#allocation7 + $0xa8] sm:$0xff]  ;;  %v1558_v22 = vld [vmem:[#allocation7 + $0x20] sm:$0xff]  ;;  %v1565_v26 = vld [vmem:[#allocation7 + $0x58] sm:$0xff] }
  0x40   : > { %570 = vmatpush.bf16.msra.mxu2 %v1533_v27  ;;  %v610_v57 = vor.u32 %v609_v47, %v608_v46  ;;  %v355_v59 = vsel %vm343_vm0, %v350_v50, %v354_v51  ;;  %v358_v2 = vor.u32 %v356_v38, %v354_v51  ;;  %v1574_v23 = vld [vmem:[#allocation7 + $0xa0] sm:$0xff]  ;;  %v1557_v27 = vld [vmem:[#allocation7 + $0x18] sm:$0xff]  ;;  %v1563_v36 = vld [vmem:[#allocation7 + $0x48] sm:$0xff]  ;;  %v785_v50 = vlaneseq }
  0x41   : > { %666 = vmatpush.bf16.msra.mxu3 %v1541_v28  ;;  %v1573_v28 = vld [vmem:[#allocation7 + $0x98] sm:$0xff]  ;;  %v1555_v37 = vld [vmem:[#allocation7 + $0x8] sm:$0xff]  ;;  %v1570_v41 = vld [vmem:[#allocation7 + $0x80] sm:$0xff] }
  0x42   : > { %414 = vmatpush.bf16.msra.mxu0 %v1524_v31  ;;  %v611_v61 = vsel %vm604_vm2, %v607_v56, %v610_v57  ;;  %v1572_v31 = vld [vmem:[#allocation7 + $0x90] sm:$0xff]  ;;  %v1571_v38 = vld [vmem:[#allocation7 + $0x88] sm:$0xff] }
  0x43   : > { %482 = vmatpush.bf16.msra.mxu1 %v1516_v32 }
  0x44   : > { %571 = vmatpush.bf16.msra.mxu2 %v1532_v34 }
  0x45   : > { %667 = vmatpush.bf16.msra.mxu3 %v1540_v35 }
  0x46   : > { %415 = vmatpush.bf16.msra.mxu0 %v1523_v39  ;;  %v1562_v39 = vld [vmem:[#allocation7 + $0x40] sm:$0xff] }
  0x47   : > { %483 = vmatpush.bf16.msra.mxu1 %v1515_v40  ;;  %v1554_v40 = vld [vmem:[#allocation7] sm:$0xff] }
  0x48   : > { %572 = vmatpush.bf16.msra.mxu2 %v1531_v42 }
  0x49   : > { %668 = vmatpush.bf16.msra.mxu3 %v1539_v43 }
  0x4a   : > { %416 = vmatpush.bf16.msra.mxu0 %v1522_v48 }
  0x4b   : > { %484 = vmatpush.bf16.msra.mxu1 %v1514_v49 }
  0x4c   : > { %573 = vmatpush.bf16.msra.mxu2 %v1530_v52 }
  0x4d   : > { %669 = vmatpush.bf16.msra.mxu3 %v1538_v53  ;;  %417 = vmatmul.bf16.vlgmr.msra.gmra.mxu0 %v355_v59  ;;  %v786_v53 = vshrl.u32 %v785_v50, 7 }
  0x4e   : > { %754 = vmatpush.bf16.msrb.mxu0 %v1553_v58  ;;  %485 = vmatmul.bf16.vlgmr.msra.gmra.mxu1 %v2016_v29  ;;  %v1564_v29 = vld [vmem:[#allocation7 + $0x50] sm:$0xff] }
  0x4f   : > { %574 = vmatmul.bf16.vlgmr.msra.gmra.mxu2 %v515_v60  ;;  %879 = vmatpush.bf16.msrb.mxu1 %v1561_v10  ;;  %v787_v60 = vadd.s32 8, %v786_v53 }
  0x50   : > { %670 = vmatmul.bf16.vlgmr.msra.gmra.mxu3 %v611_v61  ;;  %961 = vmatpush.bf16.msrb.mxu2 %v1569_v9 }
  0x51   : > { %1044 = vmatpush.bf16.msrb.mxu3 %v1577_v11  ;;  %v1858_v11 = vmov 0.0|0.0  }
  0x52   : > { %755 = vmatpush.bf16.msrb.mxu0 %v1552_v62  ;;  %v1672_v62 = vld [vmem:[%s2089_s2] ss:$0 sm:$0xff] }
  0x53   : > { %880 = vmatpush.bf16.msrb.mxu1 %v1560_v13 }
  0x54   : > { %962 = vmatpush.bf16.msrb.mxu2 %v1568_v12 }
  0x55   : > { %1045 = vmatpush.bf16.msrb.mxu3 %v1576_v14 }
  0x56   : > { %756 = vmatpush.bf16.msrb.mxu0 %v1551_v63 }
  0x57   : > { %881 = vmatpush.bf16.msrb.mxu1 %v1559_v19 }
  0x58   : > { %963 = vmatpush.bf16.msrb.mxu2 %v1567_v16 }
  0x59   : > { %1046 = vmatpush.bf16.msrb.mxu3 %v1575_v20 }
  0x5a   : > { %757 = vmatpush.bf16.msrb.mxu0 %v1550_v0  ;;  %v792_v0 = vadd.s32 4294967295, %v786_v53 }
  0x5b   : > { %882 = vmatpush.bf16.msrb.mxu1 %v1558_v22 }
  0x5c   : > { %964 = vmatpush.bf16.msrb.mxu2 %v1566_v21  ;;  %vm795_vm4 = vcmp.ge.s32.totalorder %v792_v0, 0 }
  0x5d   : > { %422 = vmatmul.bf16.gmra.mxu0 %v358_v2  ;;  %1047 = vmatpush.bf16.msrb.mxu3 %v1574_v23 }
  0x5e   : > { %758 = vmatpush.bf16.msrb.mxu0 %v1549_v1  ;;  %490 = vmatmul.bf16.gmra.mxu1 %v2018_v30  ;;  %v1556_v30 = vld [vmem:[#allocation7 + $0x10] sm:$0xff]  ;;  %v793_v1 = vadd.s32 4294967295, %v787_v60 }
  0x5f   : > { %579 = vmatmul.bf16.gmra.mxu2 %v514_v55  ;;  %883 = vmatpush.bf16.msrb.mxu1 %v1557_v27  ;;  %v1098_v27 = vrot.slane %v2002_v15, 3 }
  0x60   : > { %675 = vmatmul.bf16.gmra.mxu3 %v610_v57  ;;  %965 = vmatpush.bf16.msrb.mxu2 %v1565_v26  ;;  %vm799_vm5 = vcmp.lt.s32.totalorder %v793_v1, 12 }
  0x61   : > { %1048 = vmatpush.bf16.msrb.mxu3 %v1573_v28  ;;  %vm1436_vm6 = vmpackc.low %vm799_vm5, %vm795_vm4  ;;  %v1099_v28 = vrot.slane %v2005_v17, 3 }
  0x62   : > { %759 = vmatpush.bf16.msrb.mxu0 %v1548_v3 }
  0x63   : > { %884 = vmatpush.bf16.msrb.mxu1 %v1556_v30  ;;  %v1673_v30 = vld [vmem:[%s2091_s4] ss:$0 sm:$0xff] }
  0x64   : > { %966 = vmatpush.bf16.msrb.mxu2 %v1564_v29 }
  0x65   : > { %1049 = vmatpush.bf16.msrb.mxu3 %v1572_v31 }
  0x66   : > { %760 = vmatpush.bf16.msrb.mxu0 %v1547_v4 }
  0x67   : > { %885 = vmatpush.bf16.msrb.mxu1 %v1555_v37 }
  0x68   : > { %967 = vmatpush.bf16.msrb.mxu2 %v1563_v36 }
  0x69   : > { %1050 = vmatpush.bf16.msrb.mxu3 %v1571_v38 }
  0x6a   : > { %761 = vmatpush.bf16.msrb.mxu0 %v1546_v5 }
  0x6b   : > { %886 = vmatpush.bf16.msrb.mxu1 %v1554_v40  ;;  %v1101_v40 = vrot.slane %v2008_v18, 3 }
  0x6c   : > { %968 = vmatpush.bf16.msrb.mxu2 %v1562_v39 }
  0x6d   : > { %762 = vmatmul.bf16.vlgmr.msrb.gmra.mxu0 %v703_v8  ;;  %1051 = vmatpush.bf16.msrb.mxu3 %v1570_v41 }
  0x7d   : > { %767 = vmatmul.bf16.gmra.mxu0 %v702_v7 }
  0xca   : > { %v418_v24 = vpop.f32.mrf.mxu0 }
  0xcb   : > { %v486_v25 = vpop.f32.mrf.mxu1 }
  0xcc   : > { %v487_v51 = vadd.f32 %v486_v25, %v418_v24 }
  0xd2   : > { %v575_v32 = vpop.f32.mrf.mxu2  ;;  %v420_v34 = vpop.f32.mrf.mxu0 }
  0xd3   : > { %v671_v33 = vpop.f32.mrf.mxu3  ;;  %v488_v35 = vpop.f32.mrf.mxu1  ;;  %v584_v52 = vadd.f32 %v575_v32, %v487_v51 }
  0xd4   : > { %v489_v57 = vadd.f32 %v488_v35, %v420_v34 }
  0xd5   : > { %v680_v58 = vadd.f32 %v671_v33, %v584_v52  ;;  %v1100_v33 = vsel %vm1097_vm7, %v1098_v27, %v1099_v28 }
  0xda   : > { %v577_v42 = vpop.f32.mrf.mxu2  ;;  %v423_v44 = vpop.f32.mrf.mxu0 }
  0xdb   : > { %v673_v43 = vpop.f32.mrf.mxu3  ;;  %v491_v45 = vpop.f32.mrf.mxu1  ;;  %v585_v59 = vadd.f32 %v577_v42, %v489_v57  ;;  %v1102_v44 = vsel %vm1097_vm7, %v1099_v28, %v1101_v40 }
  0xdd   : > { %v681_v63 = vadd.f32 %v673_v43, %v585_v59 }
  0xe2   : > { %v580_v46 = vpop.f32.mrf.mxu2  ;;  %v425_v48 = vpop.f32.mrf.mxu0 }
  0xe3   : > { %v676_v47 = vpop.f32.mrf.mxu3  ;;  %v493_v49 = vpop.f32.mrf.mxu1 }
  0xea   : > { %v582_v54 = vpop.f32.mrf.mxu2  ;;  %v763_v56 = vpop.f32.mrf.mxu0 }
  0xeb   : > { %v678_v55 = vpop.f32.mrf.mxu3  ;;  %v772_v61 = vadd.f32 %v763_v56, %v680_v58 }
  0xed   : > { %v779_v3 = vadd.f32 %v1672_v62, %v772_v61 }
  0xef   : > { %v782_v6 = vmax.f32 %v779_v3, 0.0 }
  0xf2   : > { %v765_v2 = vpop.f32.mrf.mxu0 }
  0xf3   : > { %v773_v4 = vadd.f32 %v765_v2, %v681_v63 }
  0xf5   : > { %v780_v5 = vadd.f32 %v1672_v62, %v773_v4 }
  0xf7   : > { %v783_v7 = vmax.f32 %v780_v5, 0.0 }
  0xf9   : > { %v1437_v8 = vpack.c.bf16 %v783_v7, %v782_v6 }
  0xfa   : > { %v768_v9 = vpop.f32.mrf.mxu0 }
  0xfb   : > { %1438 = vmatmul.msk.bf16.vlgmr.msrb.gmra.mxu1 %vm1436_vm6, %v1437_v8  ;;  %1473 = vmatmul.msk.bf16.vlgmr.msrb.gmra.mxu2 %vm1436_vm6, %v1437_v8 }
  0xfc   : > { %1508 = vmatmul.msk.bf16.vlgmr.msrb.gmra.mxu3 %vm1436_vm6, %v1437_v8 }
 0x102   : > { %v770_v10 = vpop.f32.mrf.mxu0 }
 0x10b   : > { %974 = vmatmul.bf16.gmra.mxu2 %v1858_v11  ;;  %892 = vmatmul.bf16.gmra.mxu1 %v1858_v11 }
 0x10c   : > { %1057 = vmatmul.bf16.gmra.mxu3 %v1858_v11 }
 0x178   : > { %v888_v12 = vpop.f32.mrf.mxu1 }
 0x17e   : > { %v970_v13 = vpop.f32.mrf.mxu2 }
 0x17f   : > { %v1053_v14 = vpop.f32.mrf.mxu3  ;;  %v1066_v20 = vrot.slane %v970_v13, 1 }
 0x180   : > { %v890_v16 = vpop.f32.mrf.mxu1  ;;  %v1079_v25 = vrot.slane %v1053_v14, 2 }
 0x186   : > { %v972_v19 = vpop.f32.mrf.mxu2 }
 0x187   : > { %v1067_v21 = vrot.slane %v972_v19, 1  ;;  %v1055_v22 = vpop.f32.mrf.mxu3 }
 0x188   : > { %v1080_v23 = vrot.slane %v1055_v22, 2  ;;  %v893_v24 = vpop.f32.mrf.mxu1 }
 0x189   : > { %v1068_v26 = vsel %vm512_vm1, %v1066_v20, %v1067_v21 }
 0x18a   : > { %v1073_v29 = vadd.f32 %v1068_v26, %v888_v12  ;;  %v1081_v31 = vsel %vm700_vm3, %v1079_v25, %v1080_v23 }
 0x18c   : > { %v1086_v32 = vadd.f32 %v1081_v31, %v1073_v29 }
 0x18e   : > { %v1092_v34 = vadd.f32 %v1673_v30, %v1086_v32  ;;  %v975_v35 = vpop.f32.mrf.mxu2 }
 0x18f   : > { %v1069_v36 = vrot.slane %v975_v35, 1  ;;  %v1058_v37 = vpop.f32.mrf.mxu3 }
 0x190   : > { %v1105_v15 = vadd.f32 %v1100_v33, %v1092_v34  ;;  %v1082_v38 = vrot.slane %v1058_v37, 2  ;;  %v894_v17 = vpop.f32.mrf.mxu1 }
 0x191   : > { %v1070_v39 = vsel %vm512_vm1, %v1067_v21, %v1069_v36 }
 0x192   : > { %1107 = vst [vmem:[%s295_s15] sm:$0xff] %v1105_v15  ;;  %v1074_v41 = vadd.f32 %v1070_v39, %v890_v16  ;;  %v1083_v42 = vsel %vm700_vm3, %v1080_v23, %v1082_v38 }
 0x194   : > { %v1087_v43 = vadd.f32 %v1083_v42, %v1074_v41 }
 0x196   : > { %v1093_v45 = vadd.f32 %v1673_v30, %v1087_v43  ;;  %v977_v46 = vpop.f32.mrf.mxu2 }
 0x197   : > { %v1060_v47 = vpop.f32.mrf.mxu3 }
 0x198   : > { %v1106_v18 = vadd.f32 %v1102_v44, %v1093_v45 }
 0x19a   : > { %1108 = vst [vmem:[%s295_s15 + $0x8] sm:$0xff] %v1106_v18 }
 0x19b   : > { %1791 = shalt.err (!%p1788_p0)
}
 0x19c   : > { %s1859_s25 = smov 128   ;;  %s1860_s28 = smov 8  }
 0x19d   : > { %1592 = dma.vmem_to_hbm [thread:$0]  (%p1970_p7), %s1125_s21, 256, %s1127_s16, %s1110_s27, %s1859_s25, %s1859_s25, %s1860_s28  }
 0x19e PF: > { %s1141_s8 = sand.u32 1, %s1830_s18   ;;  %p1606_p3 = pnand %p1238_p11, %p1940_p6 }
 0x19f   : > { %s1142_s7 = scalar_lea.sflag [#allocation4], %s1141_s8 }
 0x1a0   : > { %p1607_p5 = pneg %p1606_p3 }
 0x1a2   : > { %1825 = dma.done.wait (%p1607_p5), %s1142_s7, 256  }
 0x1a3   : > { %1827 = vsyncadd (%p1607_p5), %s1142_s7, 4294967040  ;;  %s22_s23 = sadd.s32 1, %s1850_s23   ;;  %s2103_s18 = smov %s1834_s19 }
 0x1a4   : > { %p19_p9 = scmp.ge.s32.totalorder %s22_s23, 4   ;;  %s2104_s19 = smov %s1838_s20 }
 0x1a5   : > { %s2105_s20 = smov %s1978_s10  ;;  %s2106_s21 = smov %s1846_s22 }
 0x1a6   : > { %s2107_s22 = smov %s2109_s24  ;;  %21 = sbr.rel (!%p19_p9) target bundleno = 10 (0xa), region = 99 }
 0x1ab   :  { %1148 = vsyncpa [#allocation3], 1 }
 0x1ac   :  { %1150 = vsyncpa [#allocation3 + $0x1], 1 }
 0x1ad   :  { %1151 = vsyncpa [#allocation6], 1 }
 0x1ae   :  { %1152 = vsyncpa [#allocation4], 1 }
 0x1af   :  { %1154 = vsyncpa [#allocation4 + $0x1], 1 }

// kernel: tpu_custom_call.1
= control target key start
LH: loop header
LB: loop body
LE: loop exit
PB: predicated region body
PF: predicated region fallthrough
CT: control target
= control target key end

     0   :  { %s2087_s0 = inlined_call_operand.hbm [shape: f32[2,1,24,128], index: 0, kind: input, shape index: {}]   ;;  %s2088_s1 = inlined_call_operand.hbm [shape: bf16[5,128,128], index: 1, kind: input, shape index: {}]   ;;  %s2089_s2 = inlined_call_operand.vmem [shape: f32[1,128], index: 2, kind: input, shape index: {}]   ;;  %s2090_s3 = inlined_call_operand.hbm [shape: bf16[3,128,128], index: 3, kind: input, shape index: {}]   ;;  %s2091_s4 = inlined_call_operand.vmem [shape: f32[1,128], index: 4, kind: input, shape index: {}]   ;;  %s2092_s5 = inlined_call_operand.hbm [shape: f32[2,1,16,128], index: 5, kind: output, shape index: {}]  }
   0x1   :  { %2093 = sst [smem:[#allocation12_spill]] %s2088_s1 }
   0x2   :  { %2094 = sst [smem:[#allocation13_spill]] %s2090_s3 }
   0x3   :  { %10 = vsyncpa [#allocation3], 0 }
   0x4   :  { %12 = vsyncpa [#allocation3 + $0x1], 0 }
   0x5   :  { %13 = vsyncpa [#allocation6], 0 }
   0x6   :  { %14 = vsyncpa [#allocation4], 0 }
   0x7   :  { %16 = vsyncpa [#allocation4 + $0x1], 0  ;;  %s1891_s18 = smov 0   ;;  %s1893_s19 = smov 0  }
   0x8   :  { %s1895_s20 = smov 0   ;;  %s1897_s21 = smov 0  }
   0x9   :  { %s1899_s22 = smov 0   ;;  %s1901_s23 = smov 0  }
   0xa LB: > { %s1233_s24 = sadd.s32 4294967295, %s1850_s23   ;;  %s1234_s25 = sadd.s32 4294967294, %s1850_s23   ;;  %s1850_s23 = sphi %s1901_s23, %s22_s23   ;;  %s1846_s22 = sphi %s1899_s22, %s2107_s22   ;;  %s1842_s21 = sphi %s1897_s21, %s2106_s21   ;;  %s1838_s20 = sphi %s1895_s20, %s2105_s20   ;;  %s1834_s19 = sphi %s1893_s19, %s2104_s19   ;;  %s1830_s18 = sphi %s1891_s18, %s2103_s18  }
   0xb   : > { %p56_p0 = scmp.ne.s32.totalorder %s1834_s19, %s1830_s18  ;;  %p1925_p1 = scmp.eq.s32.totalorder %s1233_s24, 0 }
   0xc   : > { %p1929_p2 = scmp.eq.s32.totalorder %s1233_s24, 1  ;;  %p172_p3 = scmp.eq.s32.totalorder %s1234_s25, 1 }
   0xd   : > { %p1935_p4 = por %p1925_p1, %p56_p0  ;;  %p1235_p5 = scmp.ge.s32.totalorder %s1850_s23, 1 }
   0xe   : > { %p1940_p6 = por %p172_p3, %p56_p0  ;;  %p179_p7 = scmp.lt.s32.totalorder %s1850_s23, 3 }
   0xf   : > { %s2099_s1 = sld [smem:[#allocation12_spill]]  ;;  %s1852_s9 = smov [#allocation5]  }
  0x10   : > { %p1948_p8 = pnand %p1235_p5, %p179_p7  ;;  %s192_s10 = sshll.u32 %s1852_s9, 4  ;;  %s193_s10 = int_to_ptr.vmem [resolvable:$true] %s192_s10 }
  0x11   : > { %p1238_p11 = scmp.ge.s32.totalorder %s1850_s23, 2  ;;  %s2101_s3 = sld [smem:[#allocation13_spill]] }
  0x12   : > { %p1594_p9 = pneg %p1948_p8  ;;  %s1853_s14 = smov 64  }
  0x13   : > { %s1854_s15 = smov 4   ;;  %s1855_s16 = smov [#allocation7]  }
  0x14   : > { %p1595_p10 = pnand %p1594_p9, %p1925_p1  ;;  %s209_s17 = sshll.u32 %s1855_s16, 4  ;;  %s210_s17 = int_to_ptr.vmem [resolvable:$true] %s209_s17 }
  0x15   : > { %s190_s7 = sshll.u32 %s2099_s1, 4  ;;  %s34_s24 = sadd.s32 1, %s1846_s22  ;;  %s191_s7 = int_to_ptr.hbm [resolvable:$true] %s190_s7 }
  0x16   : > { %1597 = dma.hbm_to_vmem [thread:$0]  (!%p1595_p10), %s191_s7, 5120, %s193_s10, [#allocation6], %s1853_s14, %s1853_s14, %s1854_s15  }
  0x17   : > { %s207_s13 = sshll.u32 %s2101_s3, 4  ;;  %s43_s25 = sadd.s32 1, %s1838_s20  ;;  %s208_s13 = int_to_ptr.hbm [resolvable:$true] %s207_s13 }
  0x18   : > { %1600 = dma.hbm_to_vmem [thread:$0]  (!%p1595_p10), %s208_s13, 3072, %s210_s17, [#allocation6], %s1853_s14, %s1853_s14, %s1854_s15  }
  0x19   : > { %p36_p12 = scmp.ge.s32.totalorder %s34_s24, 2  ;;  %p50_p13 = scmp.ne.s32.totalorder %s1838_s20, %s1834_s19 }
  0x1a   : > { %p51_p0 = scmp.eq.s32.totalorder %s1850_s23, 0  ;;  %p1611_p3 = scmp.lt.s32.totalorder %s1850_s23, 2 }
  0x1b   : > { %s2109_s24 = smov (%p36_p12, %s34_s24), 0  ;;  %p1970_p7 = por %p1929_p2, %p50_p13 }
  0x1c   : > { %p52_p5 = por %p51_p0, %p50_p13  ;;  %s38_s6 = ssub.s32 %s1846_s22, %s2109_s24 }
  0x1d   : > { %s226_s7 = sand.u32 1, %s1838_s20   ;;  %p41_p9 = scmp.eq.s32.totalorder %s38_s6, 0 }
  0x1e   : > { %s1579_s9 = smul.u32 24, %s226_s7  ;;  %p1602_p10 = pnand %p1611_p3, %p52_p5 }
  0x1f   : > { %s1978_s10 = scalar_select %p41_p9, %s1838_s20, %s43_s25  }
  0x20   : > { %s1580_s11 = smul.u32 24, %s1846_s22  ;;  %s230_s12 = scalar_lea.vmem [#allocation2], %s1579_s9 }
  0x21   : > { %s240_s13 = sshll.u32 %s230_s12, 4  ;;  %s227_s17 = scalar_lea.sflag [#allocation3], %s226_s7  ;;  %s241_s13 = int_to_ptr.vmem [resolvable:$true] %s240_s13 }
  0x22   : > { %s237_s16 = scalar_lea.hbm %s2087_s0, %s1580_s11  ;;  %s1856_s1 = smov 128  }
  0x23   : > { %s238_s27 = sshll.u32 %s237_s16, 4  ;;  %s1857_s3 = smov 8   ;;  %s239_s27 = int_to_ptr.hbm [resolvable:$true] %s238_s27 }
  0x24   : > { %1604 = dma.hbm_to_vmem [thread:$0]  (!%p1602_p10), %s239_s27, 384, %s241_s13, %s227_s17, %s1856_s1, %s1856_s1, %s1857_s3  }
  0x25   : > { %252 = sbr.rel (%p1948_p8) target bundleno = 414 (0x19e), region = 40  ;;  %s1987_s25 = sand.u32 (!%p1948_p8), 1, %s1834_s19  }
  0x26   : > { %s1581_s6 = smul.u32 (!%p1948_p8), 24, %s1987_s25  ;;  %s255_s9 = scalar_lea.sflag (!%p1948_p8), [#allocation3], %s1987_s25 }
  0x28   : > { %s1991_s12 = scalar_lea.vmem (!%p1948_p8), [#allocation2], %s1581_s6 }
  0x2a   : > { %1817 = dma.done.wait (%p1935_p4), %s255_s9, 384  }
  0x2b   : > { %1819 = vsyncadd (%p1935_p4), %s255_s9, 4294966912 }
  0x2c   : > { %1821 = dma.done.wait (%p1925_p1), [#allocation6], 8192  }
  0x2d   : > { %1823 = vsyncadd (%p1925_p1), [#allocation6], 4294959104  ;;  %v1529_v0 = vld [vmem:[#allocation5 + $0x78] sm:$0xff]  ;;  %v1528_v4 = vld [vmem:[#allocation5 + $0x70] sm:$0xff]  ;;  %vm343_vm0 = vsmask.f32 7424 }
  0x2e   : > { %v1521_v1 = vld [vmem:[#allocation5 + $0x38] sm:$0xff]  ;;  %409 = vmatpush.bf16.msra.mxu0 %v1529_v0  ;;  %v1520_v5 = vld [vmem:[#allocation5 + $0x30] sm:$0xff]  ;;  %v1527_v8 = vld [vmem:[#allocation5 + $0x68] sm:$0xff]  ;;  %vm512_vm1 = vcmask 1046528   ;;  %vm604_vm2 = vsmask.f32 6400 }
  0x2f   : > { %v1537_v2 = vld [vmem:[#allocation5 + $0xb8] sm:$0xff]  ;;  %477 = vmatpush.bf16.msra.mxu1 %v1521_v1  ;;  %v1536_v6 = vld [vmem:[#allocation5 + $0xb0] sm:$0xff]  ;;  %v1519_v9 = vld [vmem:[#allocation5 + $0x28] sm:$0xff]  ;;  %vm700_vm3 = vcmask 1045504   ;;  %vm1097_vm7 = vcmask 1044480   ;;  %s1243_s8 = sshll.u32 %s1987_s25, 4 }
  0x30   : > { %v1545_v3 = vld [vmem:[#allocation5 + $0xf8] sm:$0xff]  ;;  %566 = vmatpush.bf16.msra.mxu2 %v1537_v2  ;;  %v1544_v7 = vld [vmem:[#allocation5 + $0xf0] sm:$0xff]  ;;  %v1535_v10 = vld [vmem:[#allocation5 + $0xa8] sm:$0xff]  ;;  %s1578_s7 = sshll.u32 %s1842_s21, 4  ;;  %s295_s15 = scalar_lea.vmem [#allocation8], %s1243_s8 }
  0x31   : > { %662 = vmatpush.bf16.msra.mxu3 %v1545_v3  ;;  %v1543_v11 = vld [vmem:[#allocation5 + $0xe8] sm:$0xff]  ;;  %v1526_v12 = vld [vmem:[#allocation5 + $0x60] sm:$0xff]  ;;  %v2005_v17 = vld [vmem:[%s1991_s12 + $0x8] sm:$0xff]  ;;  %s1123_s14 = scalar_lea.hbm %s2092_s5, %s1578_s7  ;;  %s1124_s21 = sshll.u32 %s295_s15, 4  ;;  %s1125_s21 = int_to_ptr.vmem [resolvable:$true] %s1124_s21 }
  0x32   : > { %410 = vmatpush.bf16.msra.mxu0 %v1528_v4  ;;  %v1518_v13 = vld [vmem:[#allocation5 + $0x20] sm:$0xff]  ;;  %v2002_v15 = vld [vmem:[%s1991_s12] sm:$0xff]  ;;  %v300_v20 = vpack.c.bf16 %v2005_v17, %v2005_v17  ;;  %v1525_v23 = vld [vmem:[#allocation5 + $0x58] sm:$0xff]  ;;  %s1126_s16 = sshll.u32 %s1123_s14, 4  ;;  %s1110_s27 = scalar_lea.sflag [#allocation4], %s1987_s25  ;;  %s1127_s16 = int_to_ptr.hbm [resolvable:$true] %s1126_s16 }
  0x33   : > { %478 = vmatpush.bf16.msra.mxu1 %v1520_v5  ;;  %v1534_v14 = vld [vmem:[#allocation5 + $0xa0] sm:$0xff]  ;;  %v299_v19 = vpack.c.bf16 %v2002_v15, %v2002_v15  ;;  %v1517_v24 = vld [vmem:[#allocation5 + $0x18] sm:$0xff]  ;;  %v1524_v31 = vld [vmem:[#allocation5 + $0x50] sm:$0xff]  ;;  %s1778_s17 = sshra.s32 %s1127_s16, 4  ;;  %s1784_s1 = scalar_lea.hbm %s2092_s5, 32  ;;  %s1779_s17 = int_to_ptr.hbm [resolvable:$true] %s1778_s17 }
  0x34   : > { %567 = vmatpush.bf16.msra.mxu2 %v1536_v6  ;;  %v1542_v16 = vld [vmem:[#allocation5 + $0xe0] sm:$0xff]  ;;  %v339_v25 = vunpack.c.l.b16 %v300_v20  ;;  %v1533_v27 = vld [vmem:[#allocation5 + $0x98] sm:$0xff]  ;;  %v1516_v32 = vld [vmem:[#allocation5 + $0x10] sm:$0xff]  ;;  %s1780_s6 = scalar_lea.hbm %s1779_s17, 16  ;;  %p1785_p8 = scmp.lt.s32.totalorder %s1779_s17, %s2092_s5 }
  0x35   : > { %663 = vmatpush.bf16.msra.mxu3 %v1544_v7  ;;  %v2008_v18 = vld [vmem:[%s1991_s12 + $0x10] sm:$0xff]  ;;  %v338_v22 = vunpack.c.l.b16 %v299_v19  ;;  %v1532_v34 = vld [vmem:[#allocation5 + $0x90] sm:$0xff]  ;;  %v1523_v39 = vld [vmem:[#allocation5 + $0x48] sm:$0xff]  ;;  %p1781_p1 = scmp.ne.s32.totalorder %s1779_s17, %s1780_s6  ;;  %p1786_p12 = scmp.lt.s32.totalorder %s1784_s1, %s1780_s6 }
  0x36   : > { %411 = vmatpush.bf16.msra.mxu0 %v1527_v8  ;;  %v301_v21 = vpack.c.bf16 %v2008_v18, %v2008_v18  ;;  %v1541_v28 = vld [vmem:[#allocation5 + $0xd8] sm:$0xff]  ;;  %v1540_v35 = vld [vmem:[#allocation5 + $0xd0] sm:$0xff]  ;;  %v1515_v40 = vld [vmem:[#allocation5 + $0x8] sm:$0xff] }
  0x37   : > { %479 = vmatpush.bf16.msra.mxu1 %v1519_v9  ;;  %v2016_v29 = vpack.c.b16 %v339_v25, %v338_v22  ;;  %v1531_v42 = vld [vmem:[#allocation5 + $0x88] sm:$0xff]  ;;  %v1522_v48 = vld [vmem:[#allocation5 + $0x40] sm:$0xff]  ;;  %v1553_v58 = vld [vmem:[#allocation5 + $0x138] sm:$0xff]  ;;  %p1782_p2 = pnand %p1781_p1, %p1970_p7  ;;  %p1787_p13 = por %p1786_p12, %p1785_p8 }
  0x38   : > { %568 = vmatpush.bf16.msra.mxu2 %v1535_v10  ;;  %v340_v26 = vunpack.c.l.b16 %v301_v21  ;;  %v1539_v43 = vld [vmem:[#allocation5 + $0xc8] sm:$0xff]  ;;  %v1514_v49 = vld [vmem:[#allocation5] sm:$0xff]  ;;  %v1552_v62 = vld [vmem:[#allocation5 + $0x130] sm:$0xff] }
  0x39   : > { %664 = vmatpush.bf16.msra.mxu3 %v1543_v11  ;;  %v347_v33 = vshll.u32 %v2016_v29, 16  ;;  %v345_v36 = vshrl.u32 %v2016_v29, 16  ;;  %v1530_v52 = vld [vmem:[#allocation5 + $0x80] sm:$0xff]  ;;  %v513_v54 = vrot.slane %v2016_v29, 1  ;;  %v1551_v63 = vld [vmem:[#allocation5 + $0x128] sm:$0xff]  ;;  %v1549_v1 = vld [vmem:[#allocation5 + $0x118] sm:$0xff]  ;;  %p1783_p4 = pneg %p1782_p2 }
  0x3a   : > { %412 = vmatpush.bf16.msra.mxu0 %v1526_v12  ;;  %v2018_v30 = vpack.c.b16 %v340_v26, %v340_v26  ;;  %v1538_v53 = vld [vmem:[#allocation5 + $0xc0] sm:$0xff]  ;;  %v1548_v3 = vld [vmem:[#allocation5 + $0x110] sm:$0xff]  ;;  %v1547_v4 = vld [vmem:[#allocation5 + $0x108] sm:$0xff]  ;;  %v701_v6 = vrot.slane %v2016_v29, 2 }
  0x3b   : > { %480 = vmatpush.bf16.msra.mxu1 %v1518_v13  ;;  %v349_v41 = vrot.slane %v347_v33, 1  ;;  %v605_v44 = vrot.slane %v345_v36, 1  ;;  %v606_v45 = vrot.slane %v347_v33, 2  ;;  %v1550_v0 = vld [vmem:[#allocation5 + $0x120] sm:$0xff]  ;;  %v1569_v9 = vld [vmem:[#allocation7 + $0x78] sm:$0xff]  ;;  %v1568_v12 = vld [vmem:[#allocation7 + $0x70] sm:$0xff]  ;;  %p1788_p0 = pnand %p1787_p13, %p1783_p4 }
  0x3c   : > { %569 = vmatpush.bf16.msra.mxu2 %v1534_v14  ;;  %v352_v37 = vshll.u32 %v2018_v30, 16  ;;  %v356_v38 = vshrl.u32 %v2018_v30, 16  ;;  %v514_v55 = vrot.slane %v2018_v30, 1  ;;  %v1546_v5 = vld [vmem:[#allocation5 + $0x100] sm:$0xff]  ;;  %v702_v7 = vrot.slane %v2018_v30, 2  ;;  %v1561_v10 = vld [vmem:[#allocation7 + $0x38] sm:$0xff] }
  0x3d   : > { %665 = vmatpush.bf16.msra.mxu3 %v1542_v16  ;;  %v350_v50 = vor.u32 %v349_v41, %v345_v36  ;;  %v607_v56 = vor.u32 %v606_v45, %v605_v44  ;;  %v1577_v11 = vld [vmem:[#allocation7 + $0xb8] sm:$0xff]  ;;  %v1560_v13 = vld [vmem:[#allocation7 + $0x30] sm:$0xff]  ;;  %v1567_v16 = vld [vmem:[#allocation7 + $0x68] sm:$0xff] }
  0x3e   : > { %413 = vmatpush.bf16.msra.mxu0 %v1525_v23  ;;  %v608_v46 = vrot.slane %v356_v38, 1  ;;  %v609_v47 = vrot.slane %v352_v37, 2  ;;  %v354_v51 = vrot.slane %v352_v37, 1  ;;  %v515_v60 = vsel %vm512_vm1, %v513_v54, %v514_v55  ;;  %v1576_v14 = vld [vmem:[#allocation7 + $0xb0] sm:$0xff]  ;;  %v1559_v19 = vld [vmem:[#allocation7 + $0x28] sm:$0xff]  ;;  %v1566_v21 = vld [vmem:[#allocation7 + $0x60] sm:$0xff] }
  0x3f   : > { %481 = vmatpush.bf16.msra.mxu1 %v1517_v24  ;;  %v703_v8 = vsel %vm700_vm3, %v701_v6, %v702_v7  ;;  %v1575_v20 = vld [vmem:[#allocation7 + $0xa8] sm:$0xff]  ;;  %v1558_v22 = vld [vmem:[#allocation7 + $0x20] sm:$0xff]  ;;  %v1565_v26 = vld [vmem:[#allocation7 + $0x58] sm:$0xff] }
  0x40   : > { %570 = vmatpush.bf16.msra.mxu2 %v1533_v27  ;;  %v610_v57 = vor.u32 %v609_v47, %v608_v46  ;;  %v355_v59 = vsel %vm343_vm0, %v350_v50, %v354_v51  ;;  %v358_v2 = vor.u32 %v356_v38, %v354_v51  ;;  %v1574_v23 = vld [vmem:[#allocation7 + $0xa0] sm:$0xff]  ;;  %v1557_v27 = vld [vmem:[#allocation7 + $0x18] sm:$0xff]  ;;  %v1563_v36 = vld [vmem:[#allocation7 + $0x48] sm:$0xff]  ;;  %v785_v50 = vlaneseq }
  0x41   : > { %666 = vmatpush.bf16.msra.mxu3 %v1541_v28  ;;  %v1573_v28 = vld [vmem:[#allocation7 + $0x98] sm:$0xff]  ;;  %v1555_v37 = vld [vmem:[#allocation7 + $0x8] sm:$0xff]  ;;  %v1570_v41 = vld [vmem:[#allocation7 + $0x80] sm:$0xff] }
  0x42   : > { %414 = vmatpush.bf16.msra.mxu0 %v1524_v31  ;;  %v611_v61 = vsel %vm604_vm2, %v607_v56, %v610_v57  ;;  %v1572_v31 = vld [vmem:[#allocation7 + $0x90] sm:$0xff]  ;;  %v1571_v38 = vld [vmem:[#allocation7 + $0x88] sm:$0xff] }
  0x43   : > { %482 = vmatpush.bf16.msra.mxu1 %v1516_v32 }
  0x44   : > { %571 = vmatpush.bf16.msra.mxu2 %v1532_v34 }
  0x45   : > { %667 = vmatpush.bf16.msra.mxu3 %v1540_v35 }
  0x46   : > { %415 = vmatpush.bf16.msra.mxu0 %v1523_v39  ;;  %v1562_v39 = vld [vmem:[#allocation7 + $0x40] sm:$0xff] }
  0x47   : > { %483 = vmatpush.bf16.msra.mxu1 %v1515_v40  ;;  %v1554_v40 = vld [vmem:[#allocation7] sm:$0xff] }
  0x48   : > { %572 = vmatpush.bf16.msra.mxu2 %v1531_v42 }
  0x49   : > { %668 = vmatpush.bf16.msra.mxu3 %v1539_v43 }
  0x4a   : > { %416 = vmatpush.bf16.msra.mxu0 %v1522_v48 }
  0x4b   : > { %484 = vmatpush.bf16.msra.mxu1 %v1514_v49 }
  0x4c   : > { %573 = vmatpush.bf16.msra.mxu2 %v1530_v52 }
  0x4d   : > { %669 = vmatpush.bf16.msra.mxu3 %v1538_v53  ;;  %417 = vmatmul.bf16.vlgmr.msra.gmra.mxu0 %v355_v59  ;;  %v786_v53 = vshrl.u32 %v785_v50, 7 }
  0x4e   : > { %754 = vmatpush.bf16.msrb.mxu0 %v1553_v58  ;;  %485 = vmatmul.bf16.vlgmr.msra.gmra.mxu1 %v2016_v29  ;;  %v1564_v29 = vld [vmem:[#allocation7 + $0x50] sm:$0xff] }
  0x4f   : > { %574 = vmatmul.bf16.vlgmr.msra.gmra.mxu2 %v515_v60  ;;  %879 = vmatpush.bf16.msrb.mxu1 %v1561_v10  ;;  %v787_v60 = vadd.s32 8, %v786_v53 }
  0x50   : > { %670 = vmatmul.bf16.vlgmr.msra.gmra.mxu3 %v611_v61  ;;  %961 = vmatpush.bf16.msrb.mxu2 %v1569_v9 }
  0x51   : > { %1044 = vmatpush.bf16.msrb.mxu3 %v1577_v11  ;;  %v1858_v11 = vmov 0.0|0.0  }
  0x52   : > { %755 = vmatpush.bf16.msrb.mxu0 %v1552_v62  ;;  %v1672_v62 = vld [vmem:[%s2089_s2] ss:$0 sm:$0xff] }
  0x53   : > { %880 = vmatpush.bf16.msrb.mxu1 %v1560_v13 }
  0x54   : > { %962 = vmatpush.bf16.msrb.mxu2 %v1568_v12 }
  0x55   : > { %1045 = vmatpush.bf16.msrb.mxu3 %v1576_v14 }
  0x56   : > { %756 = vmatpush.bf16.msrb.mxu0 %v1551_v63 }
  0x57   : > { %881 = vmatpush.bf16.msrb.mxu1 %v1559_v19 }
  0x58   : > { %963 = vmatpush.bf16.msrb.mxu2 %v1567_v16 }
  0x59   : > { %1046 = vmatpush.bf16.msrb.mxu3 %v1575_v20 }
  0x5a   : > { %757 = vmatpush.bf16.msrb.mxu0 %v1550_v0  ;;  %v792_v0 = vadd.s32 4294967295, %v786_v53 }
  0x5b   : > { %882 = vmatpush.bf16.msrb.mxu1 %v1558_v22 }
  0x5c   : > { %964 = vmatpush.bf16.msrb.mxu2 %v1566_v21  ;;  %vm795_vm4 = vcmp.ge.s32.totalorder %v792_v0, 0 }
  0x5d   : > { %422 = vmatmul.bf16.gmra.mxu0 %v358_v2  ;;  %1047 = vmatpush.bf16.msrb.mxu3 %v1574_v23 }
  0x5e   : > { %758 = vmatpush.bf16.msrb.mxu0 %v1549_v1  ;;  %490 = vmatmul.bf16.gmra.mxu1 %v2018_v30  ;;  %v1556_v30 = vld [vmem:[#allocation7 + $0x10] sm:$0xff]  ;;  %v793_v1 = vadd.s32 4294967295, %v787_v60 }
  0x5f   : > { %579 = vmatmul.bf16.gmra.mxu2 %v514_v55  ;;  %883 = vmatpush.bf16.msrb.mxu1 %v1557_v27  ;;  %v1098_v27 = vrot.slane %v2002_v15, 3 }
  0x60   : > { %675 = vmatmul.bf16.gmra.mxu3 %v610_v57  ;;  %965 = vmatpush.bf16.msrb.mxu2 %v1565_v26  ;;  %vm799_vm5 = vcmp.lt.s32.totalorder %v793_v1, 12 }
  0x61   : > { %1048 = vmatpush.bf16.msrb.mxu3 %v1573_v28  ;;  %vm1436_vm6 = vmpackc.low %vm799_vm5, %vm795_vm4  ;;  %v1099_v28 = vrot.slane %v2005_v17, 3 }
  0x62   : > { %759 = vmatpush.bf16.msrb.mxu0 %v1548_v3 }
  0x63   : > { %884 = vmatpush.bf16.msrb.mxu1 %v1556_v30  ;;  %v1673_v30 = vld [vmem:[%s2091_s4] ss:$0 sm:$0xff] }
  0x64   : > { %966 = vmatpush.bf16.msrb.mxu2 %v1564_v29 }
  0x65   : > { %1049 = vmatpush.bf16.msrb.mxu3 %v1572_v31 }
  0x66   : > { %760 = vmatpush.bf16.msrb.mxu0 %v1547_v4 }
  0x67   : > { %885 = vmatpush.bf16.msrb.mxu1 %v1555_v37 }
  0x68   : > { %967 = vmatpush.bf16.msrb.mxu2 %v1563_v36 }
  0x69   : > { %1050 = vmatpush.bf16.msrb.mxu3 %v1571_v38 }
  0x6a   : > { %761 = vmatpush.bf16.msrb.mxu0 %v1546_v5 }
  0x6b   : > { %886 = vmatpush.bf16.msrb.mxu1 %v1554_v40  ;;  %v1101_v40 = vrot.slane %v2008_v18, 3 }
  0x6c   : > { %968 = vmatpush.bf16.msrb.mxu2 %v1562_v39 }
  0x6d   : > { %762 = vmatmul.bf16.vlgmr.msrb.gmra.mxu0 %v703_v8  ;;  %1051 = vmatpush.bf16.msrb.mxu3 %v1570_v41 }
  0x7d   : > { %767 = vmatmul.bf16.gmra.mxu0 %v702_v7 }
  0xca   : > { %v418_v24 = vpop.f32.mrf.mxu0 }
  0xcb   : > { %v486_v25 = vpop.f32.mrf.mxu1 }
  0xcc   : > { %v487_v51 = vadd.f32 %v486_v25, %v418_v24 }
  0xd2   : > { %v575_v32 = vpop.f32.mrf.mxu2  ;;  %v420_v34 = vpop.f32.mrf.mxu0 }
  0xd3   : > { %v671_v33 = vpop.f32.mrf.mxu3  ;;  %v488_v35 = vpop.f32.mrf.mxu1  ;;  %v584_v52 = vadd.f32 %v575_v32, %v487_v51 }
  0xd4   : > { %v489_v57 = vadd.f32 %v488_v35, %v420_v34 }
  0xd5   : > { %v680_v58 = vadd.f32 %v671_v33, %v584_v52  ;;  %v1100_v33 = vsel %vm1097_vm7, %v1098_v27, %v1099_v28 }
  0xda   : > { %v577_v42 = vpop.f32.mrf.mxu2  ;;  %v423_v44 = vpop.f32.mrf.mxu0 }
  0xdb   : > { %v673_v43 = vpop.f32.mrf.mxu3  ;;  %v491_v45 = vpop.f32.mrf.mxu1  ;;  %v585_v59 = vadd.f32 %v577_v42, %v489_v57  ;;  %v1102_v44 = vsel %vm1097_vm7, %v1099_v28, %v1101_v40 }
  0xdd   : > { %v681_v63 = vadd.f32 %v673_v43, %v585_v59 }
  0xe2   : > { %v580_v46 = vpop.f32.mrf.mxu2  ;;  %v425_v48 = vpop.f32.mrf.mxu0 }
  0xe3   : > { %v676_v47 = vpop.f32.mrf.mxu3  ;;  %v493_v49 = vpop.f32.mrf.mxu1 }
  0xea   : > { %v582_v54 = vpop.f32.mrf.mxu2  ;;  %v763_v56 = vpop.f32.mrf.mxu0 }
  0xeb   : > { %v678_v55 = vpop.f32.mrf.mxu3  ;;  %v772_v61 = vadd.f32 %v763_v56, %v680_v58 }
  0xed   : > { %v779_v3 = vadd.f32 %v1672_v62, %v772_v61 }
  0xef   : > { %v782_v6 = vmax.f32 %v779_v3, 0.0 }
  0xf2   : > { %v765_v2 = vpop.f32.mrf.mxu0 }
  0xf3   : > { %v773_v4 = vadd.f32 %v765_v2, %v681_v63 }
  0xf5   : > { %v780_v5 = vadd.f32 %v1672_v62, %v773_v4 }
  0xf7   : > { %v783_v7 = vmax.f32 %v780_v5, 0.0 }
  0xf9   : > { %v1437_v8 = vpack.c.bf16 %v783_v7, %v782_v6 }
  0xfa   : > { %v768_v9 = vpop.f32.mrf.mxu0 }
  0xfb   : > { %1438 = vmatmul.msk.bf16.vlgmr.msrb.gmra.mxu1 %vm1436_vm6, %v1437_v8  ;;  %1473 = vmatmul.msk.bf16.vlgmr.msrb.gmra.mxu2 %vm1436_vm6, %v1437_v8 }
  0xfc   : > { %1508 = vmatmul.msk.bf16.vlgmr.msrb.gmra.mxu3 %vm1436_vm6, %v1437_v8 }
 0x102   : > { %v770_v10 = vpop.f32.mrf.mxu0 }
 0x10b   : > { %974 = vmatmul.bf16.gmra.mxu2 %v1858_v11  ;;  %892 = vmatmul.bf16.gmra.mxu1 %v1858_v11 }
 0x10c   : > { %1057 = vmatmul.bf16.gmra.mxu3 %v1858_v11 }
 0x178   : > { %v888_v12 = vpop.f32.mrf.mxu1 }
 0x17e   : > { %v970_v13 = vpop.f32.mrf.mxu2 }
 0x17f   : > { %v1053_v14 = vpop.f32.mrf.mxu3  ;;  %v1066_v20 = vrot.slane %v970_v13, 1 }
 0x180   : > { %v890_v16 = vpop.f32.mrf.mxu1  ;;  %v1079_v25 = vrot.slane %v1053_v14, 2 }
 0x186   : > { %v972_v19 = vpop.f32.mrf.mxu2 }
 0x187   : > { %v1067_v21 = vrot.slane %v972_v19, 1  ;;  %v1055_v22 = vpop.f32.mrf.mxu3 }
 0x188   : > { %v1080_v23 = vrot.slane %v1055_v22, 2  ;;  %v893_v24 = vpop.f32.mrf.mxu1 }
 0x189   : > { %v1068_v26 = vsel %vm512_vm1, %v1066_v20, %v1067_v21 }
 0x18a   : > { %v1073_v29 = vadd.f32 %v1068_v26, %v888_v12  ;;  %v1081_v31 = vsel %vm700_vm3, %v1079_v25, %v1080_v23 }
 0x18c   : > { %v1086_v32 = vadd.f32 %v1081_v31, %v1073_v29 }
 0x18e   : > { %v1092_v34 = vadd.f32 %v1673_v30, %v1086_v32  ;;  %v975_v35 = vpop.f32.mrf.mxu2 }
 0x18f   : > { %v1069_v36 = vrot.slane %v975_v35, 1  ;;  %v1058_v37 = vpop.f32.mrf.mxu3 }
 0x190   : > { %v1105_v15 = vadd.f32 %v1100_v33, %v1092_v34  ;;  %v1082_v38 = vrot.slane %v1058_v37, 2  ;;  %v894_v17 = vpop.f32.mrf.mxu1 }
 0x191   : > { %v1070_v39 = vsel %vm512_vm1, %v1067_v21, %v1069_v36 }
 0x192   : > { %1107 = vst [vmem:[%s295_s15] sm:$0xff] %v1105_v15  ;;  %v1074_v41 = vadd.f32 %v1070_v39, %v890_v16  ;;  %v1083_v42 = vsel %vm700_vm3, %v1080_v23, %v1082_v38 }
 0x194   : > { %v1087_v43 = vadd.f32 %v1083_v42, %v1074_v41 }
 0x196   : > { %v1093_v45 = vadd.f32 %v1673_v30, %v1087_v43  ;;  %v977_v46 = vpop.f32.mrf.mxu2 }
 0x197   : > { %v1060_v47 = vpop.f32.mrf.mxu3 }
 0x198   : > { %v1106_v18 = vadd.f32 %v1102_v44, %v1093_v45 }
 0x19a   : > { %1108 = vst [vmem:[%s295_s15 + $0x8] sm:$0xff] %v1106_v18 }
 0x19b   : > { %1791 = shalt.err (!%p1788_p0)
}
 0x19c   : > { %s1859_s25 = smov 128   ;;  %s1860_s28 = smov 8  }
 0x19d   : > { %1592 = dma.vmem_to_hbm [thread:$0]  (%p1970_p7), %s1125_s21, 256, %s1127_s16, %s1110_s27, %s1859_s25, %s1859_s25, %s1860_s28  }
 0x19e PF: > { %s1141_s8 = sand.u32 1, %s1830_s18   ;;  %p1606_p3 = pnand %p1238_p11, %p1940_p6 }
 0x19f   : > { %s1142_s7 = scalar_lea.sflag [#allocation4], %s1141_s8 }
 0x1a0   : > { %p1607_p5 = pneg %p1606_p3 }
 0x1a2   : > { %1825 = dma.done.wait (%p1607_p5), %s1142_s7, 256  }
 0x1a3   : > { %1827 = vsyncadd (%p1607_p5), %s1142_s7, 4294967040  ;;  %s22_s23 = sadd.s32 1, %s1850_s23   ;;  %s2103_s18 = smov %s1834_s19 }
 0x1a4   : > { %p19_p9 = scmp.ge.s32.totalorder %s22_s23, 4   ;;  %s2104_s19 = smov %s1838_s20 }
 0x1a5   : > { %s2105_s20 = smov %s1978_s10  ;;  %s2106_s21 = smov %s1846_s22 }
 0x1a6   : > { %s2107_s22 = smov %s2109_s24  ;;  %21 = sbr.rel (!%p19_p9) target bundleno = 10 (0xa), region = 99 }
 0x1ab   :  { %1148 = vsyncpa [#allocation3], 1 }
 0x1ac   :  { %1150 = vsyncpa [#allocation3 + $0x1], 1 }
 0x1ad   :  { %1151 = vsyncpa [#allocation6], 1 }
 0x1ae   :  { %1152 = vsyncpa [#allocation4], 1 }
 0x1af   :  { %1154 = vsyncpa [#allocation4 + $0x1], 1 }

</bundles_post_ra>
